<compile_context>
chip_gen: v6e
topology: v6e:2x2x1
jax: 0.10.0
libtpu: 0.0.40
codegen_flags: <defaults>
</compile_context>

<pallas_src>
import numpy as np
import jax
import jax.numpy as jnp
from jax.experimental import pallas as pl
from jax.experimental.pallas import tpu as pltpu

# ---------------- configuration (small, consistent with the module) ----------
SEQ_LEN     = 16            # configs.seq_len  (backcast_length)
PRED_LEN    = 8             # configs.pred_len (forecast_length)
CHANNELS    = 3             # configs.enc_in
HIDDEN      = 32            # hidden_layer_units
NB_BLOCKS   = 3             # nb_blocks_per_stack
DECOMP_VARS = ["trend", "seasonal", "residual"]   # -> trend / seasonality / generic
N_VARS      = len(DECOMP_VARS)
BATCH       = 2


# ---------------- helpers (match the PyTorch reference math) -----------------
def linear_space(backcast_length, forecast_length, is_forecast=True):
    horizon = forecast_length if is_forecast else backcast_length
    return np.arange(0, horizon) / horizon


def trend_basis(t, p):
    # T = [t**i for i in range(p)]  -> (p, len(t))
    return np.array([t ** i for i in range(p)]).astype(np.float32)


def seasonality_basis(t, p):
    p1, p2 = (p // 2, p // 2) if p % 2 == 0 else (p // 2, p // 2 + 1)
    s1 = np.array([np.cos(2 * np.pi * i * t) for i in range(p1)])
    s2 = np.array([np.sin(2 * np.pi * i * t) for i in range(p2)])
    return np.concatenate([s1, s2], axis=0).astype(np.float32)   # (p, len(t))


def get_stack_type(v):
    if v in ("trend", "avg", "approximation"):
        return "trend"
    elif v in ("residual", "raw"):
        return "generic"
    return "seasonality"


# ---------------- deterministic parameter construction -----------------------
def init_linear(key, out_dim, in_dim, bias=True, scale=0.05):
    kw, kb = jax.random.split(key)
    w = scale * jax.random.normal(kw, (out_dim, in_dim), jnp.float32)
    b = scale * jax.random.normal(kb, (out_dim,), jnp.float32) if bias else None
    return w, b


def make_block_params(key, stype):
    """One N-BEATS block.  All block types are expressed uniformly as:
       backcast = theta_b @ Bb + bias_b ;  forecast = theta_f @ Bf + bias_f
       (for trend/seasonality Bb/Bf are fixed bases and biases are zero;
        for generic they are the learned backcast_fc / forecast_fc)."""
    keys = jax.random.split(key, 8)
    H, L, F = HIDDEN, SEQ_LEN, PRED_LEN
    w1, b1 = init_linear(keys[0], H, L)
    w2, b2 = init_linear(keys[1], H, H)
    w3, b3 = init_linear(keys[2], H, H)
    w4, b4 = init_linear(keys[3], H, H)
    back_t = linear_space(L, F, is_forecast=False)
    fore_t = linear_space(L, F, is_forecast=True)

    if stype == "trend":
        td = 4                                          # get_theta_dim('trend')
        wtb, _ = init_linear(keys[4], td, H, bias=False)
        wtf = wtb                                       # share_thetas=True
        Bb = jnp.asarray(trend_basis(back_t, td))
        Bf = jnp.asarray(trend_basis(fore_t, td))
        biasb = jnp.zeros((L,), jnp.float32)
        biasf = jnp.zeros((F,), jnp.float32)
    elif stype == "seasonality":
        td = F                                          # thetas_dim = forecast_length
        wtb, _ = init_linear(keys[4], td, H, bias=False)
        wtf = wtb                                       # share_thetas=True
        Bb = jnp.asarray(seasonality_basis(back_t, td))
        Bf = jnp.asarray(seasonality_basis(fore_t, td))
        biasb = jnp.zeros((L,), jnp.float32)
        biasf = jnp.zeros((F,), jnp.float32)
    else:                                               # generic
        td = 8
        wtb, _ = init_linear(keys[4], td, H, bias=False)
        wtf, _ = init_linear(keys[5], td, H, bias=False)
        wback, bback = init_linear(keys[6], L, td)      # backcast_fc
        wfore, bfore = init_linear(keys[7], F, td)      # forecast_fc
        Bb, biasb = wback.T, bback
        Bf, biasf = wfore.T, bfore

    return dict(w1=w1, b1=b1, w2=w2, b2=b2, w3=w3, b3=b3, w4=w4, b4=b4,
                wtb=wtb, wtf=wtf, Bb=Bb, biasb=biasb, Bf=Bf, biasf=biasf)


# ---------------- host-side fusion into block-diagonal weights ----------------
def build_fused_params(all_blocks):
    """Fuse the 3 variables into block-diagonal, pre-transposed weights.
       Shapes (per block, NB_BLOCKS stacked on the leading axis):
         W1:(48,96) B1:(1,96)  W2..W4:(96,96) B2..B4:(1,96)
         WTB:(96, 48+F)        BIASBF:(1, 48+F)
       WTB := WT @ BASIS is precomputed on the host (the theta projection and
       basis expansion are both linear, so folding them is exact up to fp
       rounding).  Forecast columns of BASIS are shared across variables, so
       the single matmul already performs the sum-over-variables composition."""
    L, F, H, V = SEQ_LEN, PRED_LEN, HIDDEN, N_VARS
    tds  = [int(all_blocks[v][0]["wtb"].shape[0]) for v in DECOMP_VARS]
    offs = np.concatenate([[0], np.cumsum([2 * t for t in tds])]).astype(int)
    TD   = int(offs[-1])                       # 2*(4+8+8) = 40
    BF_W = V * L + F                           # 48 backcast cols + F shared forecast cols

    W1 = np.zeros((NB_BLOCKS, V * L, V * H), np.float32)
    W2 = np.zeros((NB_BLOCKS, V * H, V * H), np.float32)
    W3 = np.zeros_like(W2)
    W4 = np.zeros_like(W2)
    B1 = np.zeros((NB_BLOCKS, 1, V * H), np.float32)
    B2 = np.zeros_like(B1); B3 = np.zeros_like(B1); B4 = np.zeros_like(B1)
    WT = np.zeros((NB_BLOCKS, V * H, TD), np.float64)
    BASIS  = np.zeros((NB_BLOCKS, TD, BF_W), np.float64)
    BIASBF = np.zeros((NB_BLOCKS, 1, BF_W), np.float32)

    for blk in range(NB_BLOCKS):
        for v, var in enumerate(DECOMP_VARS):
            p = {k: np.asarray(val) for k, val in all_blocks[var][blk].items()}
            td, off = tds[v], int(offs[v])
            W1[blk, v*L:(v+1)*L, v*H:(v+1)*H] = p["w1"].T     # pre-transposed
            W2[blk, v*H:(v+1)*H, v*H:(v+1)*H] = p["w2"].T
            W3[blk, v*H:(v+1)*H, v*H:(v+1)*H] = p["w3"].T
            W4[blk, v*H:(v+1)*H, v*H:(v+1)*H] = p["w4"].T
            B1[blk, 0, v*H:(v+1)*H] = p["b1"]
            B2[blk, 0, v*H:(v+1)*H] = p["b2"]
            B3[blk, 0, v*H:(v+1)*H] = p["b3"]
            B4[blk, 0, v*H:(v+1)*H] = p["b4"]
            WT[blk, v*H:(v+1)*H, off:off+td]      = p["wtb"].T
            WT[blk, v*H:(v+1)*H, off+td:off+2*td] = p["wtf"].T
            BASIS[blk, off:off+td,      v*L:(v+1)*L] = p["Bb"]     # per-var backcast cols
            BASIS[blk, off+td:off+2*td, V*L:]        = p["Bf"]     # shared forecast cols
            BIASBF[blk, 0, v*L:(v+1)*L]  = p["biasb"]
            BIASBF[blk, 0, V*L:]        += p["biasf"]              # summed over vars

    # Fold the theta projection into the basis expansion: one (96, 56) matmul
    # per block inside the kernel instead of two dependent ones.
    WTB = np.einsum("bij,bjk->bik", WT, BASIS).astype(np.float32)  # (NB, 96, 56)

    names = ["W1", "B1", "W2", "B2", "W3", "B3", "W4", "B4", "WTB", "BIASBF"]
    arrs  = [W1, B1, W2, B2, W3, B3, W4, B4, WTB, BIASBF]
    return {n: jnp.asarray(a) for n, a in zip(names, arrs)}


# ---------------- Pallas kernel: whole N-BEATS model in one shot --------------
def nbeats_fused_kernel(x_ref, w1_ref, b1_ref, w2_ref, b2_ref, w3_ref, b3_ref,
                        w4_ref, b4_ref, wtb_ref, biasbf_ref, out_ref, x2d_ref):
    B = x_ref.shape[0]
    C, L, V = CHANNELS, SEQ_LEN, N_VARS
    back_w = V * L

    # In-kernel (var, chan) re-layout: x_enc[b, v*C+c, :] -> x2d[b*C+c, v*L:(v+1)*L].
    # 6 tiny static slice copies (ld/st slots only; MXU is the bottleneck, so free).
    for b in range(B):
        for v in range(V):
            x2d_ref[b*C:(b+1)*C, v*L:(v+1)*L] = x_ref[b, v*C:(v+1)*C, :]

    x = x2d_ref[...]                                # (B*C, 3*L) residual, lives in vregs
    acc = jnp.zeros(out_ref.shape, jnp.float32)     # forecast accumulator, lives in vregs

    for blk in range(NB_BLOCKS):                    # static unroll, 3 blocks
        h = jnp.maximum(jnp.dot(x, w1_ref[blk], preferred_element_type=jnp.float32) + b1_ref[blk], 0.0)
        h = jnp.maximum(jnp.dot(h, w2_ref[blk], preferred_element_type=jnp.float32) + b2_ref[blk], 0.0)
        h = jnp.maximum(jnp.dot(h, w3_ref[blk], preferred_element_type=jnp.float32) + b3_ref[blk], 0.0)
        h = jnp.maximum(jnp.dot(h, w4_ref[blk], preferred_element_type=jnp.float32) + b4_ref[blk], 0.0)
        # Folded theta->basis matmul: (B*C, 96) @ (96, 48+F)
        bf = jnp.dot(h, wtb_ref[blk], preferred_element_type=jnp.float32) + biasbf_ref[blk]
        x = x - bf[:, :back_w]                      # per-var backcast residual
        acc = acc + bf[:, back_w:]                  # forecast (already summed over vars)

    out_ref[...] = acc


def nbeats_forward(x_enc, fused):
    B = x_enc.shape[0]
    rows = B * CHANNELS                             # rows axis stacks batch*channels
    vmem = pl.BlockSpec(memory_space=pltpu.MemorySpace.VMEM)

    out = pl.pallas_call(
        nbeats_fused_kernel,
        out_shape=jax.ShapeDtypeStruct((rows, PRED_LEN), jnp.float32),
        in_specs=[vmem] * 11,
        out_specs=vmem,
        scratch_shapes=[pltpu.VMEM((rows, N_VARS * SEQ_LEN), jnp.float32)],
    )(x_enc,
      fused["W1"], fused["B1"], fused["W2"], fused["B2"],
      fused["W3"], fused["B3"], fused["W4"], fused["B4"],
      fused["WTB"], fused["BIASBF"])

    # (rows, F) -> (B, C, F) is a contiguous (free, metadata-only) reshape.
    # composition_function: sum over decomposition variables (done in-kernel).
    return out.reshape(B, CHANNELS, PRED_LEN)


nbeats_forward_jit = jax.jit(nbeats_forward)


# ---------------- pure-JAX reference for verification -------------------------
def ref_forward(x_enc, all_blocks):
    relu = jax.nn.relu
    B = x_enc.shape[0]
    outs = []
    for i, var in enumerate(DECOMP_VARS):
        x2d = x_enc[:, i * CHANNELS:(i + 1) * CHANNELS, :].reshape(B * CHANNELS, SEQ_LEN)
        acc = jnp.zeros((B * CHANNELS, PRED_LEN), jnp.float32)
        for p in all_blocks[var]:
            h = relu(x2d @ p["w1"].T + p["b1"])
            h = relu(h @ p["w2"].T + p["b2"])
            h = relu(h @ p["w3"].T + p["b3"])
            h = relu(h @ p["w4"].T + p["b4"])
            back = (h @ p["wtb"].T) @ p["Bb"] + p["biasb"]
            fore = (h @ p["wtf"].T) @ p["Bf"] + p["biasf"]
            x2d = x2d - back
            acc = acc + fore
        outs.append(acc.reshape(B, CHANNELS, PRED_LEN))
    return jnp.stack(outs, 0).sum(0)


# ---------------- main ---------------------------------------------------------
if __name__ == "__main__":
    key = jax.random.PRNGKey(0)
    kx, kp = jax.random.split(key)

    x_enc = jax.random.normal(kx, (BATCH, N_VARS * CHANNELS, SEQ_LEN), jnp.float32)
    pkeys = jax.random.split(kp, N_VARS)
    all_blocks = {var: [make_block_params(k, get_stack_type(var))
                        for k in jax.random.split(pkeys[i], NB_BLOCKS)]
                  for i, var in enumerate(DECOMP_VARS)}
    fused = build_fused_params(all_blocks)

    out = jax.block_until_ready(nbeats_forward_jit(x_enc, fused))

    ref = ref_forward(x_enc, all_blocks)
    np.testing.assert_allclose(np.asarray(out), np.asarray(ref), rtol=1e-3, atol=1e-3)

    print("KERNEL_OK")
</pallas_src>

<mosaic_0001>
module attributes {stable_mosaic.version = 11 : i64} {
  func.func @nbeats_fused_kernel(%arg0: memref<2x9x16xf32, #tpu.memory_space<vmem>>, %arg1: memref<3x48x96xf32, #tpu.memory_space<vmem>>, %arg2: memref<3x1x96xf32, #tpu.memory_space<vmem>>, %arg3: memref<3x96x96xf32, #tpu.memory_space<vmem>>, %arg4: memref<3x1x96xf32, #tpu.memory_space<vmem>>, %arg5: memref<3x96x96xf32, #tpu.memory_space<vmem>>, %arg6: memref<3x1x96xf32, #tpu.memory_space<vmem>>, %arg7: memref<3x96x96xf32, #tpu.memory_space<vmem>>, %arg8: memref<3x1x96xf32, #tpu.memory_space<vmem>>, %arg9: memref<3x96x56xf32, #tpu.memory_space<vmem>>, %arg10: memref<3x1x56xf32, #tpu.memory_space<vmem>>, %arg11: memref<6x8xf32, #tpu.memory_space<vmem>>, %arg12: memref<6x48xf32, #tpu.memory_space<vmem>>) attributes {dimension_semantics = [], scalar_prefetch = 0 : i64, scratch_operands = 1 : i64, tpu.core_type = #tpu.core_type<tc>} {
    %c0 = arith.constant 0 : index
    %c0_0 = arith.constant 0 : index
    %c0_1 = arith.constant 0 : index
    %0 = vector.load %arg0[%c0, %c0_0, %c0_1] : memref<2x9x16xf32, #tpu.memory_space<vmem>>, vector<1x3x16xf32>
    %1 = vector.shape_cast %0 : vector<1x3x16xf32> to vector<3x16xf32>
    %c0_2 = arith.constant 0 : index
    %c0_3 = arith.constant 0 : index
    %2 = vector.load %arg12[%c0_2, %c0_3] : memref<6x48xf32, #tpu.memory_space<vmem>>, vector<3x16xf32>
    tpu.vector_store %arg12[%c0_2, %c0_3], %1 {strides = array<i32>} : memref<6x48xf32, #tpu.memory_space<vmem>>, vector<3x16xf32>,
    %c0_4 = arith.constant 0 : index
    %c3 = arith.constant 3 : index
    %c0_5 = arith.constant 0 : index
    %3 = vector.load %arg0[%c0_4, %c3, %c0_5] : memref<2x9x16xf32, #tpu.memory_space<vmem>>, vector<1x3x16xf32>
    %4 = vector.shape_cast %3 : vector<1x3x16xf32> to vector<3x16xf32>
    %c0_6 = arith.constant 0 : index
    %c16 = arith.constant 16 : index
    %5 = vector.load %arg12[%c0_6, %c16] : memref<6x48xf32, #tpu.memory_space<vmem>>, vector<3x16xf32>
    tpu.vector_store %arg12[%c0_6, %c16], %4 {strides = array<i32>} : memref<6x48xf32, #tpu.memory_space<vmem>>, vector<3x16xf32>,
    %c0_7 = arith.constant 0 : index
    %c6 = arith.constant 6 : index
    %c0_8 = arith.constant 0 : index
    %6 = vector.load %arg0[%c0_7, %c6, %c0_8] : memref<2x9x16xf32, #tpu.memory_space<vmem>>, vector<1x3x16xf32>
    %7 = vector.shape_cast %6 : vector<1x3x16xf32> to vector<3x16xf32>
    %c0_9 = arith.constant 0 : index
    %c32 = arith.constant 32 : index
    %8 = vector.load %arg12[%c0_9, %c32] : memref<6x48xf32, #tpu.memory_space<vmem>>, vector<3x16xf32>
    tpu.vector_store %arg12[%c0_9, %c32], %7 {strides = array<i32>} : memref<6x48xf32, #tpu.memory_space<vmem>>, vector<3x16xf32>,
    %c1 = arith.constant 1 : index
    %c0_10 = arith.constant 0 : index
    %c0_11 = arith.constant 0 : index
    %9 = vector.load %arg0[%c1, %c0_10, %c0_11] : memref<2x9x16xf32, #tpu.memory_space<vmem>>, vector<1x3x16xf32>
    %10 = vector.shape_cast %9 : vector<1x3x16xf32> to vector<3x16xf32>
    %c3_12 = arith.constant 3 : index
    %c0_13 = arith.constant 0 : index
    %11 = vector.load %arg12[%c3_12, %c0_13] : memref<6x48xf32, #tpu.memory_space<vmem>>, vector<3x16xf32>
    tpu.vector_store %arg12[%c3_12, %c0_13], %10 {strides = array<i32>} : memref<6x48xf32, #tpu.memory_space<vmem>>, vector<3x16xf32>,
    %c1_14 = arith.constant 1 : index
    %c3_15 = arith.constant 3 : index
    %c0_16 = arith.constant 0 : index
    %12 = vector.load %arg0[%c1_14, %c3_15, %c0_16] : memref<2x9x16xf32, #tpu.memory_space<vmem>>, vector<1x3x16xf32>
    %13 = vector.shape_cast %12 : vector<1x3x16xf32> to vector<3x16xf32>
    %c3_17 = arith.constant 3 : index
    %c16_18 = arith.constant 16 : index
    %14 = vector.load %arg12[%c3_17, %c16_18] : memref<6x48xf32, #tpu.memory_space<vmem>>, vector<3x16xf32>
    tpu.vector_store %arg12[%c3_17, %c16_18], %13 {strides = array<i32>} : memref<6x48xf32, #tpu.memory_space<vmem>>, vector<3x16xf32>,
    %c1_19 = arith.constant 1 : index
    %c6_20 = arith.constant 6 : index
    %c0_21 = arith.constant 0 : index
    %15 = vector.load %arg0[%c1_19, %c6_20, %c0_21] : memref<2x9x16xf32, #tpu.memory_space<vmem>>, vector<1x3x16xf32>
    %16 = vector.shape_cast %15 : vector<1x3x16xf32> to vector<3x16xf32>
    %c3_22 = arith.constant 3 : index
    %c32_23 = arith.constant 32 : index
    %17 = vector.load %arg12[%c3_22, %c32_23] : memref<6x48xf32, #tpu.memory_space<vmem>>, vector<3x16xf32>
    tpu.vector_store %arg12[%c3_22, %c32_23], %16 {strides = array<i32>} : memref<6x48xf32, #tpu.memory_space<vmem>>, vector<3x16xf32>,
    %c0_24 = arith.constant 0 : index
    %c0_25 = arith.constant 0 : index
    %18 = vector.load %arg12[%c0_24, %c0_25] : memref<6x48xf32, #tpu.memory_space<vmem>>, vector<6x48xf32>
    %cst = arith.constant 0.000000e+00 : f32
    %19 = vector.broadcast %cst : f32 to vector<6x8xf32>
    %c0_26 = arith.constant 0 : index
    %c0_27 = arith.constant 0 : index
    %c0_28 = arith.constant 0 : index
    %20 = vector.load %arg1[%c0_26, %c0_27, %c0_28] : memref<3x48x96xf32, #tpu.memory_space<vmem>>, vector<1x48x96xf32>
    %21 = vector.shape_cast %20 : vector<1x48x96xf32> to vector<48x96xf32>
    %cst_29 = arith.constant dense<0.000000e+00> : vector<6x96xf32>
    %22 = tpu.matmul %18, %21, %cst_29 {dimension_numbers = #tpu.dot_dimension_numbers<[1], [0], [0], [1], [0, 0, 1, 1], [], []>} : vector<6x48xf32>, vector<48x96xf32>, vector<6x96xf32> -> vector<6x96xf32>
    %c0_30 = arith.constant 0 : index
    %c0_31 = arith.constant 0 : index
    %c0_32 = arith.constant 0 : index
    %23 = vector.load %arg2[%c0_30, %c0_31, %c0_32] : memref<3x1x96xf32, #tpu.memory_space<vmem>>, vector<1x1x96xf32>
    %24 = vector.shape_cast %23 : vector<1x1x96xf32> to vector<1x96xf32>
    %25 = vector.broadcast %24 : vector<1x96xf32> to vector<6x96xf32>
    %26 = arith.addf %22, %25 : vector<6x96xf32>
    %cst_33 = arith.constant 0.000000e+00 : f32
    %27 = vector.broadcast %cst_33 : f32 to vector<6x96xf32>
    %28 = arith.maximumf %26, %27 : vector<6x96xf32>
    %c0_34 = arith.constant 0 : index
    %c0_35 = arith.constant 0 : index
    %c0_36 = arith.constant 0 : index
    %29 = vector.load %arg3[%c0_34, %c0_35, %c0_36] : memref<3x96x96xf32, #tpu.memory_space<vmem>>, vector<1x96x96xf32>
    %30 = vector.shape_cast %29 : vector<1x96x96xf32> to vector<96x96xf32>
    %cst_37 = arith.constant dense<0.000000e+00> : vector<6x96xf32>
    %31 = tpu.matmul %28, %30, %cst_37 {dimension_numbers = #tpu.dot_dimension_numbers<[1], [0], [0], [1], [0, 0, 1, 1], [], []>} : vector<6x96xf32>, vector<96x96xf32>, vector<6x96xf32> -> vector<6x96xf32>
    %c0_38 = arith.constant 0 : index
    %c0_39 = arith.constant 0 : index
    %c0_40 = arith.constant 0 : index
    %32 = vector.load %arg4[%c0_38, %c0_39, %c0_40] : memref<3x1x96xf32, #tpu.memory_space<vmem>>, vector<1x1x96xf32>
    %33 = vector.shape_cast %32 : vector<1x1x96xf32> to vector<1x96xf32>
    %34 = vector.broadcast %33 : vector<1x96xf32> to vector<6x96xf32>
    %35 = arith.addf %31, %34 : vector<6x96xf32>
    %cst_41 = arith.constant 0.000000e+00 : f32
    %36 = vector.broadcast %cst_41 : f32 to vector<6x96xf32>
    %37 = arith.maximumf %35, %36 : vector<6x96xf32>
    %c0_42 = arith.constant 0 : index
    %c0_43 = arith.constant 0 : index
    %c0_44 = arith.constant 0 : index
    %38 = vector.load %arg5[%c0_42, %c0_43, %c0_44] : memref<3x96x96xf32, #tpu.memory_space<vmem>>, vector<1x96x96xf32>
    %39 = vector.shape_cast %38 : vector<1x96x96xf32> to vector<96x96xf32>
    %cst_45 = arith.constant dense<0.000000e+00> : vector<6x96xf32>
    %40 = tpu.matmul %37, %39, %cst_45 {dimension_numbers = #tpu.dot_dimension_numbers<[1], [0], [0], [1], [0, 0, 1, 1], [], []>} : vector<6x96xf32>, vector<96x96xf32>, vector<6x96xf32> -> vector<6x96xf32>
    %c0_46 = arith.constant 0 : index
    %c0_47 = arith.constant 0 : index
    %c0_48 = arith.constant 0 : index
    %41 = vector.load %arg6[%c0_46, %c0_47, %c0_48] : memref<3x1x96xf32, #tpu.memory_space<vmem>>, vector<1x1x96xf32>
    %42 = vector.shape_cast %41 : vector<1x1x96xf32> to vector<1x96xf32>
    %43 = vector.broadcast %42 : vector<1x96xf32> to vector<6x96xf32>
    %44 = arith.addf %40, %43 : vector<6x96xf32>
    %cst_49 = arith.constant 0.000000e+00 : f32
    %45 = vector.broadcast %cst_49 : f32 to vector<6x96xf32>
    %46 = arith.maximumf %44, %45 : vector<6x96xf32>
    %c0_50 = arith.constant 0 : index
    %c0_51 = arith.constant 0 : index
    %c0_52 = arith.constant 0 : index
    %47 = vector.load %arg7[%c0_50, %c0_51, %c0_52] : memref<3x96x96xf32, #tpu.memory_space<vmem>>, vector<1x96x96xf32>
    %48 = vector.shape_cast %47 : vector<1x96x96xf32> to vector<96x96xf32>
    %cst_53 = arith.constant dense<0.000000e+00> : vector<6x96xf32>
    %49 = tpu.matmul %46, %48, %cst_53 {dimension_numbers = #tpu.dot_dimension_numbers<[1], [0], [0], [1], [0, 0, 1, 1], [], []>} : vector<6x96xf32>, vector<96x96xf32>, vector<6x96xf32> -> vector<6x96xf32>
    %c0_54 = arith.constant 0 : index
    %c0_55 = arith.constant 0 : index
    %c0_56 = arith.constant 0 : index
    %50 = vector.load %arg8[%c0_54, %c0_55, %c0_56] : memref<3x1x96xf32, #tpu.memory_space<vmem>>, vector<1x1x96xf32>
    %51 = vector.shape_cast %50 : vector<1x1x96xf32> to vector<1x96xf32>
    %52 = vector.broadcast %51 : vector<1x96xf32> to vector<6x96xf32>
    %53 = arith.addf %49, %52 : vector<6x96xf32>
    %cst_57 = arith.constant 0.000000e+00 : f32
    %54 = vector.broadcast %cst_57 : f32 to vector<6x96xf32>
    %55 = arith.maximumf %53, %54 : vector<6x96xf32>
    %c0_58 = arith.constant 0 : index
    %c0_59 = arith.constant 0 : index
    %c0_60 = arith.constant 0 : index
    %56 = vector.load %arg9[%c0_58, %c0_59, %c0_60] : memref<3x96x56xf32, #tpu.memory_space<vmem>>, vector<1x96x56xf32>
    %57 = vector.shape_cast %56 : vector<1x96x56xf32> to vector<96x56xf32>
    %cst_61 = arith.constant dense<0.000000e+00> : vector<6x56xf32>
    %58 = tpu.matmul %55, %57, %cst_61 {dimension_numbers = #tpu.dot_dimension_numbers<[1], [0], [0], [1], [0, 0, 1, 1], [], []>} : vector<6x96xf32>, vector<96x56xf32>, vector<6x56xf32> -> vector<6x56xf32>
    %c0_62 = arith.constant 0 : index
    %c0_63 = arith.constant 0 : index
    %c0_64 = arith.constant 0 : index
    %59 = vector.load %arg10[%c0_62, %c0_63, %c0_64] : memref<3x1x56xf32, #tpu.memory_space<vmem>>, vector<1x1x56xf32>
    %60 = vector.shape_cast %59 : vector<1x1x56xf32> to vector<1x56xf32>
    %61 = vector.broadcast %60 : vector<1x56xf32> to vector<6x56xf32>
    %62 = arith.addf %58, %61 : vector<6x56xf32>
    %63 = vector.extract_strided_slice %62 {offsets = [0, 0], sizes = [6, 48], strides = [1, 1]} : vector<6x56xf32> to vector<6x48xf32>
    %64 = arith.subf %18, %63 : vector<6x48xf32>
    %65 = vector.extract_strided_slice %62 {offsets = [0, 48], sizes = [6, 8], strides = [1, 1]} : vector<6x56xf32> to vector<6x8xf32>
    %66 = arith.addf %19, %65 : vector<6x8xf32>
    %c1_65 = arith.constant 1 : index
    %c0_66 = arith.constant 0 : index
    %c0_67 = arith.constant 0 : index
    %67 = vector.load %arg1[%c1_65, %c0_66, %c0_67] : memref<3x48x96xf32, #tpu.memory_space<vmem>>, vector<1x48x96xf32>
    %68 = vector.shape_cast %67 : vector<1x48x96xf32> to vector<48x96xf32>
    %cst_68 = arith.constant dense<0.000000e+00> : vector<6x96xf32>
    %69 = tpu.matmul %64, %68, %cst_68 {dimension_numbers = #tpu.dot_dimension_numbers<[1], [0], [0], [1], [0, 0, 1, 1], [], []>} : vector<6x48xf32>, vector<48x96xf32>, vector<6x96xf32> -> vector<6x96xf32>
    %c1_69 = arith.constant 1 : index
    %c0_70 = arith.constant 0 : index
    %c0_71 = arith.constant 0 : index
    %70 = vector.load %arg2[%c1_69, %c0_70, %c0_71] : memref<3x1x96xf32, #tpu.memory_space<vmem>>, vector<1x1x96xf32>
    %71 = vector.shape_cast %70 : vector<1x1x96xf32> to vector<1x96xf32>
    %72 = vector.broadcast %71 : vector<1x96xf32> to vector<6x96xf32>
    %73 = arith.addf %69, %72 : vector<6x96xf32>
    %cst_72 = arith.constant 0.000000e+00 : f32
    %74 = vector.broadcast %cst_72 : f32 to vector<6x96xf32>
    %75 = arith.maximumf %73, %74 : vector<6x96xf32>
    %c1_73 = arith.constant 1 : index
    %c0_74 = arith.constant 0 : index
    %c0_75 = arith.constant 0 : index
    %76 = vector.load %arg3[%c1_73, %c0_74, %c0_75] : memref<3x96x96xf32, #tpu.memory_space<vmem>>, vector<1x96x96xf32>
    %77 = vector.shape_cast %76 : vector<1x96x96xf32> to vector<96x96xf32>
    %cst_76 = arith.constant dense<0.000000e+00> : vector<6x96xf32>
    %78 = tpu.matmul %75, %77, %cst_76 {dimension_numbers = #tpu.dot_dimension_numbers<[1], [0], [0], [1], [0, 0, 1, 1], [], []>} : vector<6x96xf32>, vector<96x96xf32>, vector<6x96xf32> -> vector<6x96xf32>
    %c1_77 = arith.constant 1 : index
    %c0_78 = arith.constant 0 : index
    %c0_79 = arith.constant 0 : index
    %79 = vector.load %arg4[%c1_77, %c0_78, %c0_79] : memref<3x1x96xf32, #tpu.memory_space<vmem>>, vector<1x1x96xf32>
    %80 = vector.shape_cast %79 : vector<1x1x96xf32> to vector<1x96xf32>
    %81 = vector.broadcast %80 : vector<1x96xf32> to vector<6x96xf32>
    %82 = arith.addf %78, %81 : vector<6x96xf32>
    %cst_80 = arith.constant 0.000000e+00 : f32
    %83 = vector.broadcast %cst_80 : f32 to vector<6x96xf32>
    %84 = arith.maximumf %82, %83 : vector<6x96xf32>
    %c1_81 = arith.constant 1 : index
    %c0_82 = arith.constant 0 : index
    %c0_83 = arith.constant 0 : index
    %85 = vector.load %arg5[%c1_81, %c0_82, %c0_83] : memref<3x96x96xf32, #tpu.memory_space<vmem>>, vector<1x96x96xf32>
    %86 = vector.shape_cast %85 : vector<1x96x96xf32> to vector<96x96xf32>
    %cst_84 = arith.constant dense<0.000000e+00> : vector<6x96xf32>
    %87 = tpu.matmul %84, %86, %cst_84 {dimension_numbers = #tpu.dot_dimension_numbers<[1], [0], [0], [1], [0, 0, 1, 1], [], []>} : vector<6x96xf32>, vector<96x96xf32>, vector<6x96xf32> -> vector<6x96xf32>
    %c1_85 = arith.constant 1 : index
    %c0_86 = arith.constant 0 : index
    %c0_87 = arith.constant 0 : index
    %88 = vector.load %arg6[%c1_85, %c0_86, %c0_87] : memref<3x1x96xf32, #tpu.memory_space<vmem>>, vector<1x1x96xf32>
    %89 = vector.shape_cast %88 : vector<1x1x96xf32> to vector<1x96xf32>
    %90 = vector.broadcast %89 : vector<1x96xf32> to vector<6x96xf32>
    %91 = arith.addf %87, %90 : vector<6x96xf32>
    %cst_88 = arith.constant 0.000000e+00 : f32
    %92 = vector.broadcast %cst_88 : f32 to vector<6x96xf32>
    %93 = arith.maximumf %91, %92 : vector<6x96xf32>
    %c1_89 = arith.constant 1 : index
    %c0_90 = arith.constant 0 : index
    %c0_91 = arith.constant 0 : index
    %94 = vector.load %arg7[%c1_89, %c0_90, %c0_91] : memref<3x96x96xf32, #tpu.memory_space<vmem>>, vector<1x96x96xf32>
    %95 = vector.shape_cast %94 : vector<1x96x96xf32> to vector<96x96xf32>
    %cst_92 = arith.constant dense<0.000000e+00> : vector<6x96xf32>
    %96 = tpu.matmul %93, %95, %cst_92 {dimension_numbers = #tpu.dot_dimension_numbers<[1], [0], [0], [1], [0, 0, 1, 1], [], []>} : vector<6x96xf32>, vector<96x96xf32>, vector<6x96xf32> -> vector<6x96xf32>
    %c1_93 = arith.constant 1 : index
    %c0_94 = arith.constant 0 : index
    %c0_95 = arith.constant 0 : index
    %97 = vector.load %arg8[%c1_93, %c0_94, %c0_95] : memref<3x1x96xf32, #tpu.memory_space<vmem>>, vector<1x1x96xf32>
    %98 = vector.shape_cast %97 : vector<1x1x96xf32> to vector<1x96xf32>
    %99 = vector.broadcast %98 : vector<1x96xf32> to vector<6x96xf32>
    %100 = arith.addf %96, %99 : vector<6x96xf32>
    %cst_96 = arith.constant 0.000000e+00 : f32
    %101 = vector.broadcast %cst_96 : f32 to vector<6x96xf32>
    %102 = arith.maximumf %100, %101 : vector<6x96xf32>
    %c1_97 = arith.constant 1 : index
    %c0_98 = arith.constant 0 : index
    %c0_99 = arith.constant 0 : index
    %103 = vector.load %arg9[%c1_97, %c0_98, %c0_99] : memref<3x96x56xf32, #tpu.memory_space<vmem>>, vector<1x96x56xf32>
    %104 = vector.shape_cast %103 : vector<1x96x56xf32> to vector<96x56xf32>
    %cst_100 = arith.constant dense<0.000000e+00> : vector<6x56xf32>
    %105 = tpu.matmul %102, %104, %cst_100 {dimension_numbers = #tpu.dot_dimension_numbers<[1], [0], [0], [1], [0, 0, 1, 1], [], []>} : vector<6x96xf32>, vector<96x56xf32>, vector<6x56xf32> -> vector<6x56xf32>
    %c1_101 = arith.constant 1 : index
    %c0_102 = arith.constant 0 : index
    %c0_103 = arith.constant 0 : index
    %106 = vector.load %arg10[%c1_101, %c0_102, %c0_103] : memref<3x1x56xf32, #tpu.memory_space<vmem>>, vector<1x1x56xf32>
    %107 = vector.shape_cast %106 : vector<1x1x56xf32> to vector<1x56xf32>
    %108 = vector.broadcast %107 : vector<1x56xf32> to vector<6x56xf32>
    %109 = arith.addf %105, %108 : vector<6x56xf32>
    %110 = vector.extract_strided_slice %109 {offsets = [0, 0], sizes = [6, 48], strides = [1, 1]} : vector<6x56xf32> to vector<6x48xf32>
    %111 = arith.subf %64, %110 : vector<6x48xf32>
    %112 = vector.extract_strided_slice %109 {offsets = [0, 48], sizes = [6, 8], strides = [1, 1]} : vector<6x56xf32> to vector<6x8xf32>
    %113 = arith.addf %66, %112 : vector<6x8xf32>
    %c2 = arith.constant 2 : index
    %c0_104 = arith.constant 0 : index
    %c0_105 = arith.constant 0 : index
    %114 = vector.load %arg1[%c2, %c0_104, %c0_105] : memref<3x48x96xf32, #tpu.memory_space<vmem>>, vector<1x48x96xf32>
    %115 = vector.shape_cast %114 : vector<1x48x96xf32> to vector<48x96xf32>
    %cst_106 = arith.constant dense<0.000000e+00> : vector<6x96xf32>
    %116 = tpu.matmul %111, %115, %cst_106 {dimension_numbers = #tpu.dot_dimension_numbers<[1], [0], [0], [1], [0, 0, 1, 1], [], []>} : vector<6x48xf32>, vector<48x96xf32>, vector<6x96xf32> -> vector<6x96xf32>
    %c2_107 = arith.constant 2 : index
    %c0_108 = arith.constant 0 : index
    %c0_109 = arith.constant 0 : index
    %117 = vector.load %arg2[%c2_107, %c0_108, %c0_109] : memref<3x1x96xf32, #tpu.memory_space<vmem>>, vector<1x1x96xf32>
    %118 = vector.shape_cast %117 : vector<1x1x96xf32> to vector<1x96xf32>
    %119 = vector.broadcast %118 : vector<1x96xf32> to vector<6x96xf32>
    %120 = arith.addf %116, %119 : vector<6x96xf32>
    %cst_110 = arith.constant 0.000000e+00 : f32
    %121 = vector.broadcast %cst_110 : f32 to vector<6x96xf32>
    %122 = arith.maximumf %120, %121 : vector<6x96xf32>
    %c2_111 = arith.constant 2 : index
    %c0_112 = arith.constant 0 : index
    %c0_113 = arith.constant 0 : index
    %123 = vector.load %arg3[%c2_111, %c0_112, %c0_113] : memref<3x96x96xf32, #tpu.memory_space<vmem>>, vector<1x96x96xf32>
    %124 = vector.shape_cast %123 : vector<1x96x96xf32> to vector<96x96xf32>
    %cst_114 = arith.constant dense<0.000000e+00> : vector<6x96xf32>
    %125 = tpu.matmul %122, %124, %cst_114 {dimension_numbers = #tpu.dot_dimension_numbers<[1], [0], [0], [1], [0, 0, 1, 1], [], []>} : vector<6x96xf32>, vector<96x96xf32>, vector<6x96xf32> -> vector<6x96xf32>
    %c2_115 = arith.constant 2 : index
    %c0_116 = arith.constant 0 : index
    %c0_117 = arith.constant 0 : index
    %126 = vector.load %arg4[%c2_115, %c0_116, %c0_117] : memref<3x1x96xf32, #tpu.memory_space<vmem>>, vector<1x1x96xf32>
    %127 = vector.shape_cast %126 : vector<1x1x96xf32> to vector<1x96xf32>
    %128 = vector.broadcast %127 : vector<1x96xf32> to vector<6x96xf32>
    %129 = arith.addf %125, %128 : vector<6x96xf32>
    %cst_118 = arith.constant 0.000000e+00 : f32
    %130 = vector.broadcast %cst_118 : f32 to vector<6x96xf32>
    %131 = arith.maximumf %129, %130 : vector<6x96xf32>
    %c2_119 = arith.constant 2 : index
    %c0_120 = arith.constant 0 : index
    %c0_121 = arith.constant 0 : index
    %132 = vector.load %arg5[%c2_119, %c0_120, %c0_121] : memref<3x96x96xf32, #tpu.memory_space<vmem>>, vector<1x96x96xf32>
    %133 = vector.shape_cast %132 : vector<1x96x96xf32> to vector<96x96xf32>
    %cst_122 = arith.constant dense<0.000000e+00> : vector<6x96xf32>
    %134 = tpu.matmul %131, %133, %cst_122 {dimension_numbers = #tpu.dot_dimension_numbers<[1], [0], [0], [1], [0, 0, 1, 1], [], []>} : vector<6x96xf32>, vector<96x96xf32>, vector<6x96xf32> -> vector<6x96xf32>
    %c2_123 = arith.constant 2 : index
    %c0_124 = arith.constant 0 : index
    %c0_125 = arith.constant 0 : index
    %135 = vector.load %arg6[%c2_123, %c0_124, %c0_125] : memref<3x1x96xf32, #tpu.memory_space<vmem>>, vector<1x1x96xf32>
    %136 = vector.shape_cast %135 : vector<1x1x96xf32> to vector<1x96xf32>
    %137 = vector.broadcast %136 : vector<1x96xf32> to vector<6x96xf32>
    %138 = arith.addf %134, %137 : vector<6x96xf32>
    %cst_126 = arith.constant 0.000000e+00 : f32
    %139 = vector.broadcast %cst_126 : f32 to vector<6x96xf32>
    %140 = arith.maximumf %138, %139 : vector<6x96xf32>
    %c2_127 = arith.constant 2 : index
    %c0_128 = arith.constant 0 : index
    %c0_129 = arith.constant 0 : index
    %141 = vector.load %arg7[%c2_127, %c0_128, %c0_129] : memref<3x96x96xf32, #tpu.memory_space<vmem>>, vector<1x96x96xf32>
    %142 = vector.shape_cast %141 : vector<1x96x96xf32> to vector<96x96xf32>
    %cst_130 = arith.constant dense<0.000000e+00> : vector<6x96xf32>
    %143 = tpu.matmul %140, %142, %cst_130 {dimension_numbers = #tpu.dot_dimension_numbers<[1], [0], [0], [1], [0, 0, 1, 1], [], []>} : vector<6x96xf32>, vector<96x96xf32>, vector<6x96xf32> -> vector<6x96xf32>
    %c2_131 = arith.constant 2 : index
    %c0_132 = arith.constant 0 : index
    %c0_133 = arith.constant 0 : index
    %144 = vector.load %arg8[%c2_131, %c0_132, %c0_133] : memref<3x1x96xf32, #tpu.memory_space<vmem>>, vector<1x1x96xf32>
    %145 = vector.shape_cast %144 : vector<1x1x96xf32> to vector<1x96xf32>
    %146 = vector.broadcast %145 : vector<1x96xf32> to vector<6x96xf32>
    %147 = arith.addf %143, %146 : vector<6x96xf32>
    %cst_134 = arith.constant 0.000000e+00 : f32
    %148 = vector.broadcast %cst_134 : f32 to vector<6x96xf32>
    %149 = arith.maximumf %147, %148 : vector<6x96xf32>
    %c2_135 = arith.constant 2 : index
    %c0_136 = arith.constant 0 : index
    %c0_137 = arith.constant 0 : index
    %150 = vector.load %arg9[%c2_135, %c0_136, %c0_137] : memref<3x96x56xf32, #tpu.memory_space<vmem>>, vector<1x96x56xf32>
    %151 = vector.shape_cast %150 : vector<1x96x56xf32> to vector<96x56xf32>
    %cst_138 = arith.constant dense<0.000000e+00> : vector<6x56xf32>
    %152 = tpu.matmul %149, %151, %cst_138 {dimension_numbers = #tpu.dot_dimension_numbers<[1], [0], [0], [1], [0, 0, 1, 1], [], []>} : vector<6x96xf32>, vector<96x56xf32>, vector<6x56xf32> -> vector<6x56xf32>
    %c2_139 = arith.constant 2 : index
    %c0_140 = arith.constant 0 : index
    %c0_141 = arith.constant 0 : index
    %153 = vector.load %arg10[%c2_139, %c0_140, %c0_141] : memref<3x1x56xf32, #tpu.memory_space<vmem>>, vector<1x1x56xf32>
    %154 = vector.shape_cast %153 : vector<1x1x56xf32> to vector<1x56xf32>
    %155 = vector.broadcast %154 : vector<1x56xf32> to vector<6x56xf32>
    %156 = arith.addf %152, %155 : vector<6x56xf32>
    %157 = vector.extract_strided_slice %156 {offsets = [0, 48], sizes = [6, 8], strides = [1, 1]} : vector<6x56xf32> to vector<6x8xf32>
    %158 = arith.addf %113, %157 : vector<6x8xf32>
    %c0_142 = arith.constant 0 : index
    %c0_143 = arith.constant 0 : index
    %159 = vector.load %arg11[%c0_142, %c0_143] : memref<6x8xf32, #tpu.memory_space<vmem>>, vector<6x8xf32>
    tpu.vector_store %arg11[%c0_142, %c0_143], %158 {strides = array<i32>} : memref<6x8xf32, #tpu.memory_space<vmem>>, vector<6x8xf32>,
    return
  }
}

</mosaic_0001>

<bundles_post_ra>
// kernel: nbeats_forward.1
= control target key start
LH: loop header
LB: loop body
LE: loop exit
PB: predicated region body
PF: predicated region fallthrough
CT: control target
= control target key end

     0   :  { %16 = vsyncpa [#allocation4], 0  ;;  %s2848_s0 = inlined_call_operand.vmem [shape: f32[2,9,16], index: 0, kind: input, shape index: {}]   ;;  %s2849_s1 = inlined_call_operand.vmem [shape: f32[3,48,96], index: 1, kind: input, shape index: {}]   ;;  %s2850_s2 = inlined_call_operand.vmem [shape: f32[3,1,96], index: 2, kind: input, shape index: {}]   ;;  %s2851_s3 = inlined_call_operand.vmem [shape: f32[3,96,96], index: 3, kind: input, shape index: {}]   ;;  %s2852_s4 = inlined_call_operand.vmem [shape: f32[3,1,96], index: 4, kind: input, shape index: {}]   ;;  %s2853_s5 = inlined_call_operand.hbm [shape: f32[3,96,96], index: 5, kind: input, shape index: {}]   ;;  %s2854_s6 = inlined_call_operand.vmem [shape: f32[3,1,96], index: 6, kind: input, shape index: {}]   ;;  %s2855_s7 = inlined_call_operand.hbm [shape: f32[3,96,96], index: 7, kind: input, shape index: {}]   ;;  %s2856_s8 = inlined_call_operand.vmem [shape: f32[3,1,96], index: 8, kind: input, shape index: {}]   ;;  %s2857_s9 = inlined_call_operand.vmem [shape: f32[3,96,56], index: 9, kind: input, shape index: {}]   ;;  %s2858_s10 = inlined_call_operand.vmem [shape: f32[3,1,56], index: 10, kind: input, shape index: {}]   ;;  %s2859_s11 = inlined_call_operand.vmem [shape: f32[6,8], index: 11, kind: output, shape index: {}]  }
   0x1   :  { %17 = vsyncpa [#allocation6], 0  ;;  %s2214_s17 = smov [#allocation3]  }
   0x2   :  { %s33_s18 = sshll.u32 %s2214_s17, 4  ;;  %s34_s18 = int_to_ptr.vmem [resolvable:$true] %s33_s18 }
   0x3   :  { %s2178_s19 = scalar_lea.vmem %s34_s18, 4608  ;;  %p2183_p1 = scmp.lt.s32.totalorder %s34_s18, %s34_s18 }
   0x4   :  { %p2179_p0 = scmp.ne.s32.totalorder %s34_s18, %s2178_s19  ;;  %p2184_p2 = scmp.lt.s32.totalorder %s2178_s19, %s2178_s19 }
   0x6   :  { %p2185_p3 = por %p2184_p2, %p2183_p1 }
   0x8   :  { %p2186_p4 = pnand %p2185_p3, %p2179_p0 }
   0xa   :  { %2189 = shalt.err (!%p2186_p4)
}
   0xb   :  { %s2215_s20 = smov 128   ;;  %s2216_s21 = smov 8  }
   0xc   :  { %39 = dma.hbm_to_vmem [thread:$0]  %s2853_s5, 4608, %s34_s18, [#allocation4], %s2215_s20, %s2215_s20, %s2216_s21  }
   0xd   :  { %s2217_s24 = smov [#allocation5]  }
   0xe   :  { %s47_s25 = sshll.u32 %s2217_s24, 4  ;;  %s48_s25 = int_to_ptr.vmem [resolvable:$true] %s47_s25 }
   0xf   :  { %s2198_s26 = scalar_lea.vmem %s48_s25, 4608  ;;  %p2203_p6 = scmp.lt.s32.totalorder %s48_s25, %s48_s25 }
  0x10   :  { %p2199_p5 = scmp.ne.s32.totalorder %s48_s25, %s2198_s26  ;;  %p2204_p7 = scmp.lt.s32.totalorder %s2198_s26, %s2198_s26 }
  0x12   :  { %p2205_p8 = por %p2204_p7, %p2203_p6 }
  0x14   :  { %p2206_p9 = pnand %p2205_p8, %p2199_p5 }
  0x16   :  { %2209 = shalt.err (!%p2206_p9)
}
  0x17   :  { %53 = dma.hbm_to_vmem [thread:$0]  %s2855_s7, 4608, %s48_s25, [#allocation6], %s2215_s20, %s2215_s20, %s2216_s21  }
  0x18   :  { %2210 = dma.done.wait [#allocation4], 4608  }
  0x19   :  { %2211 = vsyncadd [#allocation4], 4294962688 }
  0x1a   :  { %2212 = dma.done.wait [#allocation6], 4608  }
  0x1b   :  { %2213 = vsyncadd [#allocation6], 4294962688  ;;  %v2218_v0 = vmov 0.0   ;;  %vm2219_vm0 = vmmov 0   ;;  %vm67_vm1 = vcmask 124928   ;;  %s2220_s12 = smov 16  }
  0x1c   :  { %1792 = vmatprep.subr.mxu0 %v2218_v0  ;;  %1804 = vmatprep.mubr.msk.f32.mxu0 %vm2219_vm0, %v2218_v0  ;;  %v69_v1 = vld [vmem:[%s2848_s0 + $0x3] sm:$0x7]  ;;  %v76_v2 = vld [vmem:[%s2848_s0 + $0x6] sm:$0x7]  ;;  %s2221_s13 = smov 32   ;;  %v198_v9 = vld [vmem:[%s2851_s3 + $0x58] sm:$0xff] }
  0x1d   :  { %1807 = vmatprep.subr.mxu1 %v2218_v0  ;;  %1831 = vmatprep.mubr.msk.f32.mxu1 %vm2219_vm0, %v2218_v0  ;;  %v1513_v3 = vld [vmem:[%s2848_s0 + $0x13] sm:$0x7]  ;;  %v66_v4 = vld [vmem:[%s2848_s0] sm:$0x7]  ;;  %v1514_v5 = vld [vmem:[%s2848_s0 + $0x16] sm:$0x7] }
  0x1e   :  { %71 = vrot.lane.b32.xlu0 %v69_v1, %s2220_s12  ;;  %78 = vrot.lane.b32.xlu1 %v76_v2, %s2221_s13  ;;  %68 = vst.msk [vmem:[#allocation2] sm:$0x7] %vm67_vm1, %v66_v4  ;;  %v104_v6 = vld [vmem:[%s2849_s1 + $0x28] sm:$0xff]  ;;  %v1512_v7 = vld [vmem:[%s2848_s0 + $0x10] sm:$0x7]  ;;  %vm74_vm2 = vcmask 256128  }
  0x1f   :  { %1793 = vmatpush3.msra.mxu0 %v104_v6  ;;  %85 = vst.msk [vmem:[#allocation2 + $0x3] sm:$0x7] %vm67_vm1, %v1512_v7  ;;  %v103_v8 = vld [vmem:[%s2849_s1 + $0x20] sm:$0xff]  ;;  %v102_v10 = vld [vmem:[%s2849_s1 + $0x18] sm:$0xff]  ;;  %v197_v11 = vld [vmem:[%s2851_s3 + $0x50] sm:$0xff]  ;;  %1808 = vmatpush3.msra.mxu1 %v198_v9  ;;  %vm81_vm3 = vcmask 387328  }
  0x20   :  { %1794 = vmatprep.subr.mxu0 %v2218_v0  ;;  %v101_v12 = vld [vmem:[%s2849_s1 + $0x10] sm:$0xff]  ;;  %1809 = vmatprep.subr.mxu1 %v2218_v0  ;;  %v196_v13 = vld [vmem:[%s2851_s3 + $0x48] sm:$0xff]  ;;  %v195_v15 = vld [vmem:[%s2851_s3 + $0x40] sm:$0xff]  ;;  %vm112_vm4 = vcmask 392192   ;;  %vm206_vm5 = vcmask 785408   ;;  %vm1504_vm6 = vcmask 62464  }
  0x21   :  { %1795 = vmatpush3.msra.mxu0 %v103_v8  ;;  %1810 = vmatpush3.msra.mxu1 %v197_v11  ;;  %v100_v14 = vld [vmem:[%s2849_s1 + $0x8] sm:$0xff]  ;;  %v99_v16 = vld [vmem:[%s2849_s1] sm:$0xff]  ;;  %v194_v17 = vld [vmem:[%s2851_s3 + $0x38] sm:$0xff] }
  0x22   :  { %88 = vrot.lane.b32.xlu0 %v1513_v3, %s2220_s12  ;;  %94 = vrot.lane.b32.xlu1 %v1514_v5, %s2221_s13  ;;  %v193_v18 = vld [vmem:[%s2851_s3 + $0x30] sm:$0xff]  ;;  %v192_v19 = vld [vmem:[%s2851_s3 + $0x28] sm:$0xff]  ;;  %v292_v30 = vld [vmem:[#allocation3 + $0x58] sm:$0xff] }
  0x23   :  { %1796 = vmatprep.subr.mxu0 %v2218_v0  ;;  %1811 = vmatprep.subr.mxu1 %v2218_v0  ;;  %v191_v20 = vld [vmem:[%s2851_s3 + $0x20] sm:$0xff]  ;;  %v190_v21 = vld [vmem:[%s2851_s3 + $0x18] sm:$0xff]  ;;  %v189_v27 = vld [vmem:[%s2851_s3 + $0x10] sm:$0xff] }
  0x24   :  { %1797 = vmatpush3.msra.mxu0 %v102_v10  ;;  %1812 = vmatpush3.msra.mxu1 %v196_v13  ;;  %v188_v28 = vld [vmem:[%s2851_s3 + $0x8] sm:$0xff]  ;;  %v187_v29 = vld [vmem:[%s2851_s3] sm:$0xff]  ;;  %v291_v31 = vld [vmem:[#allocation3 + $0x50] sm:$0xff] }
  0x25   :  { %1798 = vmatprep.subr.mxu0 %v2218_v0  ;;  %1813 = vmatprep.subr.mxu1 %v2218_v0  ;;  %v290_v32 = vld [vmem:[#allocation3 + $0x48] sm:$0xff]  ;;  %v289_v33 = vld [vmem:[#allocation3 + $0x40] sm:$0xff]  ;;  %v288_v34 = vld [vmem:[#allocation3 + $0x38] sm:$0xff] }
  0x26   :  { %1799 = vmatpush3.msra.mxu0 %v101_v12  ;;  %1814 = vmatpush3.msra.mxu1 %v195_v15  ;;  %v287_v35 = vld [vmem:[#allocation3 + $0x30] sm:$0xff]  ;;  %v286_v36 = vld [vmem:[#allocation3 + $0x28] sm:$0xff]  ;;  %v285_v37 = vld [vmem:[#allocation3 + $0x20] sm:$0xff] }
  0x27   :  { %1800 = vmatprep.subr.mxu0 %v2218_v0  ;;  %1815 = vmatprep.subr.mxu1 %v2218_v0  ;;  %v284_v38 = vld [vmem:[#allocation3 + $0x18] sm:$0xff]  ;;  %v283_v44 = vld [vmem:[#allocation3 + $0x10] sm:$0xff]  ;;  %v282_v45 = vld [vmem:[#allocation3 + $0x8] sm:$0xff] }
  0x28   :  { %1801 = vmatpush3.msra.mxu0 %v100_v14  ;;  %1816 = vmatpush3.msra.mxu1 %v194_v17  ;;  %v1515_v39 = vld [vmem:[%s2850_s2] ss:$0 sm:$0xff]  ;;  %v281_v46 = vld [vmem:[#allocation3] sm:$0xff]  ;;  %v384_v48 = vld [vmem:[#allocation5 + $0x50] sm:$0xff] }
  0x29   :  { %1802 = vmatprep.subr.mxu0 %v2218_v0  ;;  %1817 = vmatprep.subr.mxu1 %v2218_v0  ;;  %v385_v47 = vld [vmem:[#allocation5 + $0x58] sm:$0xff]  ;;  %v383_v49 = vld [vmem:[#allocation5 + $0x48] sm:$0xff]  ;;  %v382_v50 = vld [vmem:[#allocation5 + $0x40] sm:$0xff] }
  0x2a   :  { %1803 = vmatpush3.msra.mxu0 %v99_v16  ;;  %1818 = vmatpush3.msra.mxu1 %v193_v18  ;;  %v381_v51 = vld [vmem:[#allocation5 + $0x38] sm:$0xff]  ;;  %v380_v52 = vld [vmem:[#allocation5 + $0x30] sm:$0xff]  ;;  %v379_v53 = vld [vmem:[#allocation5 + $0x28] sm:$0xff] }
  0x2b   :  { %1834 = vmatprep.subr.mxu0 %v2218_v0  ;;  %1819 = vmatprep.subr.mxu1 %v2218_v0  ;;  %v378_v54 = vld [vmem:[#allocation5 + $0x20] sm:$0xff]  ;;  %v377_v55 = vld [vmem:[#allocation5 + $0x18] sm:$0xff]  ;;  %v376_v61 = vld [vmem:[#allocation5 + $0x10] sm:$0xff] }
  0x2c   :  { %1820 = vmatpush3.msra.mxu1 %v192_v19  ;;  %v1517_v56 = vld [vmem:[%s2852_s4] ss:$0 sm:$0xff]  ;;  %v375_v62 = vld [vmem:[#allocation5 + $0x8] sm:$0xff]  ;;  %v374_v63 = vld [vmem:[#allocation5] sm:$0xff] }
  0x2d   :  { %1821 = vmatprep.subr.mxu1 %v2218_v0  ;;  %v478_v1 = vld [vmem:[%s2857_s9 + $0x58] sm:$0xff]  ;;  %v477_v2 = vld [vmem:[%s2857_s9 + $0x50] sm:$0xff]  ;;  %v476_v3 = vld [vmem:[%s2857_s9 + $0x48] sm:$0xff] }
  0x2e   :  { %1822 = vmatpush3.msra.mxu1 %v191_v20  ;;  %v475_v4 = vld [vmem:[%s2857_s9 + $0x40] sm:$0xff]  ;;  %v474_v5 = vld [vmem:[%s2857_s9 + $0x38] sm:$0xff]  ;;  %v473_v6 = vld [vmem:[%s2857_s9 + $0x30] sm:$0xff] }
  0x2f   :  { %1823 = vmatprep.subr.mxu1 %v2218_v0  ;;  %v472_v7 = vld [vmem:[%s2857_s9 + $0x28] sm:$0xff]  ;;  %v471_v8 = vld [vmem:[%s2857_s9 + $0x20] sm:$0xff]  ;;  %v470_v9 = vld [vmem:[%s2857_s9 + $0x18] sm:$0xff] }
  0x30   :  { %1824 = vmatpush3.msra.mxu1 %v190_v21  ;;  %v1519_v10 = vld [vmem:[%s2854_s6] ss:$0 sm:$0xff]  ;;  %v469_v15 = vld [vmem:[%s2857_s9 + $0x10] sm:$0xff]  ;;  %v468_v16 = vld [vmem:[%s2857_s9 + $0x8] sm:$0xff] }
  0x31   :  { %1825 = vmatprep.subr.mxu1 %v2218_v0  ;;  %v467_v17 = vld [vmem:[%s2857_s9] sm:$0xff]  ;;  %v1530_v18 = vld [vmem:[%s2849_s1 + $0x58] sm:$0xff]  ;;  %v1529_v19 = vld [vmem:[%s2849_s1 + $0x50] sm:$0xff] }
  0x32   :  { %1826 = vmatpush3.msra.mxu1 %v189_v27  ;;  %v1528_v20 = vld [vmem:[%s2849_s1 + $0x48] sm:$0xff]  ;;  %v1521_v21 = vld [vmem:[%s2856_s8] ss:$0 sm:$0xff] }
  0x33   :  { %1827 = vmatprep.subr.mxu1 %v2218_v0  ;;  %v1527_v27 = vld [vmem:[%s2849_s1 + $0x40] sm:$0xff] }
  0x34   :  { %1828 = vmatpush3.msra.mxu1 %v188_v28  ;;  %v1526_v28 = vld [vmem:[%s2849_s1 + $0x38] sm:$0xff] }
  0x35   :  { %1829 = vmatprep.subr.mxu1 %v2218_v0 }
  0x36   :  { %1830 = vmatpush3.msra.mxu1 %v187_v29  ;;  %v1525_v29 = vld [vmem:[%s2849_s1 + $0x30] sm:$0xff] }
  0x37   :  { %1861 = vmatprep.subr.mxu1 %v2218_v0 }
  0x90   :  { %v72_v22 = vpop.permute.xlu0 %71  ;;  %v79_v23 = vpop.permute.xlu1 %78 }
  0x91   :  { %75 = vst.msk [vmem:[#allocation2] sm:$0x7] %vm74_vm2, %v72_v22 }
  0x92   :  { %82 = vst.msk [vmem:[#allocation2] sm:$0x7] %vm81_vm3, %v79_v23 }
  0x94   :  { %v89_v24 = vpop.permute.xlu0 %88  ;;  %v95_v25 = vpop.permute.xlu1 %94 }
  0x95   :  { %91 = vst.msk [vmem:[#allocation2 + $0x3] sm:$0x7] %vm74_vm2, %v89_v24 }
  0x96   :  { %97 = vst.msk [vmem:[#allocation2 + $0x3] sm:$0x7] %vm81_vm3, %v95_v25 }
  0x9d   :  { %v2373_v26 = vld [vmem:[#allocation2] sm:$0x3f] }
  0x9e   :  { %1805 = vmatmul.mubr.msk.f32.vlgmr.msra.gmra.mxu0 %vm112_vm4, %v2373_v26 }
  0x9f   :  { %1858 = vmatprep.mubr.msk.f32.mxu0 %vm2219_vm0, %v2218_v0  ;;  %1835 = vmatpush3.msra.mxu0 %v292_v30  ;;  %v1545_v30 = vld [vmem:[%s2851_s3 + $0xb8] sm:$0xff] }
  0xa0   :  { %1836 = vmatprep.subr.mxu0 %v2218_v0 }
  0xa1   :  { %1837 = vmatpush3.msra.mxu0 %v291_v31  ;;  %v1544_v31 = vld [vmem:[%s2851_s3 + $0xb0] sm:$0xff] }
  0xa2   :  { %1838 = vmatprep.subr.mxu0 %v2218_v0 }
  0xa3   :  { %1839 = vmatpush3.msra.mxu0 %v290_v32  ;;  %v1543_v32 = vld [vmem:[%s2851_s3 + $0xa8] sm:$0xff] }
  0xa4   :  { %1840 = vmatprep.subr.mxu0 %v2218_v0 }
  0xa5   :  { %1841 = vmatpush3.msra.mxu0 %v289_v33  ;;  %v1542_v33 = vld [vmem:[%s2851_s3 + $0xa0] sm:$0xff] }
  0xa6   :  { %1842 = vmatprep.subr.mxu0 %v2218_v0 }
  0xa7   :  { %1843 = vmatpush3.msra.mxu0 %v288_v34  ;;  %v1541_v34 = vld [vmem:[%s2851_s3 + $0x98] sm:$0xff] }
  0xa8   :  { %1844 = vmatprep.subr.mxu0 %v2218_v0 }
  0xa9   :  { %1845 = vmatpush3.msra.mxu0 %v287_v35  ;;  %v1540_v35 = vld [vmem:[%s2851_s3 + $0x90] sm:$0xff] }
  0xaa   :  { %1846 = vmatprep.subr.mxu0 %v2218_v0 }
  0xab   :  { %1847 = vmatpush3.msra.mxu0 %v286_v36  ;;  %v1539_v36 = vld [vmem:[%s2851_s3 + $0x88] sm:$0xff] }
  0xac   :  { %1848 = vmatprep.subr.mxu0 %v2218_v0 }
  0xad   :  { %1849 = vmatpush3.msra.mxu0 %v285_v37  ;;  %v1538_v37 = vld [vmem:[%s2851_s3 + $0x80] sm:$0xff] }
  0xae   :  { %1850 = vmatprep.subr.mxu0 %v2218_v0 }
  0xaf   :  { %1851 = vmatpush3.msra.mxu0 %v284_v38  ;;  %v1537_v38 = vld [vmem:[%s2851_s3 + $0x78] sm:$0xff] }
  0xb0   :  { %1852 = vmatprep.subr.mxu0 %v2218_v0 }
  0xb1   :  { %1853 = vmatpush3.msra.mxu0 %v283_v44  ;;  %v1536_v44 = vld [vmem:[%s2851_s3 + $0x70] sm:$0xff] }
  0xb2   :  { %1854 = vmatprep.subr.mxu0 %v2218_v0 }
  0xb3   :  { %1855 = vmatpush3.msra.mxu0 %v282_v45  ;;  %v1535_v45 = vld [vmem:[%s2851_s3 + $0x68] sm:$0xff] }
  0xb4   :  { %1856 = vmatprep.subr.mxu0 %v2218_v0 }
  0xb5   :  { %1857 = vmatpush3.msra.mxu0 %v281_v46  ;;  %v757_v46 = vld [vmem:[#allocation3 + $0xb8] sm:$0xff] }
  0xb6   :  { %1888 = vmatprep.subr.mxu0 %v2218_v0 }
 0x15e   :  { %v182_v40 = vpop.f32.mrf.mxu0 }
 0x15f   :  { %v183_v41 = vadd.f32 %v1515_v39, %v182_v40  ;;  %v1523_v39 = vld [vmem:[%s2858_s10] ss:$0 sm:$0xff] }
 0x160   :  { %v1806_v42 = vpop.f32.mrf.mxu0 }
 0x161   :  { %v186_v43 = vmax.f32 %v183_v41, 0.0 }
 0x163   :  { %1832 = vmatmul.mubr.msk.f32.vlgmr.msra.gmra.mxu1 %vm206_vm5, %v186_v43 }
 0x164   :  { %1885 = vmatprep.mubr.msk.f32.mxu1 %vm2219_vm0, %v2218_v0  ;;  %1862 = vmatpush3.msra.mxu1 %v385_v47  ;;  %v756_v47 = vld [vmem:[#allocation3 + $0xb0] sm:$0xff] }
 0x165   :  { %1863 = vmatprep.subr.mxu1 %v2218_v0 }
 0x166   :  { %1864 = vmatpush3.msra.mxu1 %v384_v48  ;;  %v755_v48 = vld [vmem:[#allocation3 + $0xa8] sm:$0xff] }
 0x167   :  { %1865 = vmatprep.subr.mxu1 %v2218_v0 }
 0x168   :  { %1866 = vmatpush3.msra.mxu1 %v383_v49  ;;  %v754_v49 = vld [vmem:[#allocation3 + $0xa0] sm:$0xff] }
 0x169   :  { %1867 = vmatprep.subr.mxu1 %v2218_v0 }
 0x16a   :  { %1868 = vmatpush3.msra.mxu1 %v382_v50  ;;  %v753_v50 = vld [vmem:[#allocation3 + $0x98] sm:$0xff] }
 0x16b   :  { %1869 = vmatprep.subr.mxu1 %v2218_v0 }
 0x16c   :  { %1870 = vmatpush3.msra.mxu1 %v381_v51  ;;  %v752_v51 = vld [vmem:[#allocation3 + $0x90] sm:$0xff] }
 0x16d   :  { %1871 = vmatprep.subr.mxu1 %v2218_v0 }
 0x16e   :  { %1872 = vmatpush3.msra.mxu1 %v380_v52  ;;  %v751_v52 = vld [vmem:[#allocation3 + $0x88] sm:$0xff] }
 0x16f   :  { %1873 = vmatprep.subr.mxu1 %v2218_v0 }
 0x170   :  { %1874 = vmatpush3.msra.mxu1 %v379_v53  ;;  %v750_v53 = vld [vmem:[#allocation3 + $0x80] sm:$0xff] }
 0x171   :  { %1875 = vmatprep.subr.mxu1 %v2218_v0 }
 0x172   :  { %1876 = vmatpush3.msra.mxu1 %v378_v54  ;;  %v749_v54 = vld [vmem:[#allocation3 + $0x78] sm:$0xff] }
 0x173   :  { %1877 = vmatprep.subr.mxu1 %v2218_v0 }
 0x174   :  { %1878 = vmatpush3.msra.mxu1 %v377_v55  ;;  %v1532_v55 = vld [vmem:[%s2850_s2 + $0x1] ss:$0 sm:$0xff] }
 0x175   :  { %1879 = vmatprep.subr.mxu1 %v2218_v0 }
 0x176   :  { %1880 = vmatpush3.msra.mxu1 %v376_v61  ;;  %v747_v61 = vld [vmem:[#allocation3 + $0x68] sm:$0xff] }
 0x177   :  { %1881 = vmatprep.subr.mxu1 %v2218_v0 }
 0x178   :  { %1882 = vmatpush3.msra.mxu1 %v375_v62  ;;  %v746_v62 = vld [vmem:[#allocation3 + $0x60] sm:$0xff] }
 0x179   :  { %1883 = vmatprep.subr.mxu1 %v2218_v0 }
 0x17a   :  { %1884 = vmatpush3.msra.mxu1 %v374_v63  ;;  %v852_v63 = vld [vmem:[#allocation5 + $0xb8] sm:$0xff] }
 0x17b   :  { %1915 = vmatprep.subr.mxu1 %v2218_v0 }
 0x223   :  { %v276_v57 = vpop.f32.mrf.mxu1 }
 0x224   :  { %v277_v58 = vadd.f32 %v1517_v56, %v276_v57 }
 0x225   :  { %v1833_v59 = vpop.f32.mrf.mxu1 }
 0x226   :  { %v280_v60 = vmax.f32 %v277_v58, 0.0 }
 0x228   :  { %1859 = vmatmul.mubr.msk.f32.vlgmr.msra.gmra.mxu0 %vm206_vm5, %v280_v60  ;;  %v748_v60 = vld [vmem:[#allocation3 + $0x70] sm:$0xff] }
 0x229   :  { %1912 = vmatprep.mubr.msk.f32.mxu0 %vm2219_vm0, %v2218_v0  ;;  %1889 = vmatpush3.msra.mxu0 %v478_v1  ;;  %v851_v1 = vld [vmem:[#allocation5 + $0xb0] sm:$0xff] }
 0x22a   :  { %1890 = vmatprep.subr.mxu0 %v2218_v0 }
 0x22b   :  { %1891 = vmatpush3.msra.mxu0 %v477_v2  ;;  %v850_v2 = vld [vmem:[#allocation5 + $0xa8] sm:$0xff] }
 0x22c   :  { %1892 = vmatprep.subr.mxu0 %v2218_v0 }
 0x22d   :  { %1893 = vmatpush3.msra.mxu0 %v476_v3  ;;  %v849_v3 = vld [vmem:[#allocation5 + $0xa0] sm:$0xff] }
 0x22e   :  { %1894 = vmatprep.subr.mxu0 %v2218_v0 }
 0x22f   :  { %1895 = vmatpush3.msra.mxu0 %v475_v4  ;;  %v848_v4 = vld [vmem:[#allocation5 + $0x98] sm:$0xff] }
 0x230   :  { %1896 = vmatprep.subr.mxu0 %v2218_v0 }
 0x231   :  { %1897 = vmatpush3.msra.mxu0 %v474_v5  ;;  %v847_v5 = vld [vmem:[#allocation5 + $0x90] sm:$0xff] }
 0x232   :  { %1898 = vmatprep.subr.mxu0 %v2218_v0 }
 0x233   :  { %1899 = vmatpush3.msra.mxu0 %v473_v6  ;;  %v846_v6 = vld [vmem:[#allocation5 + $0x88] sm:$0xff] }
 0x234   :  { %1900 = vmatprep.subr.mxu0 %v2218_v0 }
 0x235   :  { %1901 = vmatpush3.msra.mxu0 %v472_v7  ;;  %v845_v7 = vld [vmem:[#allocation5 + $0x80] sm:$0xff] }
 0x236   :  { %1902 = vmatprep.subr.mxu0 %v2218_v0 }
 0x237   :  { %1903 = vmatpush3.msra.mxu0 %v471_v8  ;;  %v844_v8 = vld [vmem:[#allocation5 + $0x78] sm:$0xff] }
 0x238   :  { %1904 = vmatprep.subr.mxu0 %v2218_v0 }
 0x239   :  { %1905 = vmatpush3.msra.mxu0 %v470_v9  ;;  %v1547_v9 = vld [vmem:[%s2852_s4 + $0x1] ss:$0 sm:$0xff] }
 0x23a   :  { %1906 = vmatprep.subr.mxu0 %v2218_v0 }
 0x23b   :  { %1907 = vmatpush3.msra.mxu0 %v469_v15  ;;  %v842_v15 = vld [vmem:[#allocation5 + $0x68] sm:$0xff] }
 0x23c   :  { %1908 = vmatprep.subr.mxu0 %v2218_v0 }
 0x23d   :  { %1909 = vmatpush3.msra.mxu0 %v468_v16  ;;  %v841_v16 = vld [vmem:[#allocation5 + $0x60] sm:$0xff] }
 0x23e   :  { %1910 = vmatprep.subr.mxu0 %v2218_v0 }
 0x23f   :  { %1911 = vmatpush3.msra.mxu0 %v467_v17  ;;  %v1566_v17 = vld [vmem:[%s2857_s9 + $0xb8] sm:$0xff] }
 0x240   :  { %1930 = vmatprep.subr.mxu0 %v2218_v0 }
 0x2e8   :  { %v369_v11 = vpop.f32.mrf.mxu0 }
 0x2e9   :  { %v370_v12 = vadd.f32 %v1519_v10, %v369_v11 }
 0x2ea   :  { %v1860_v13 = vpop.f32.mrf.mxu0 }
 0x2eb   :  { %v373_v14 = vmax.f32 %v370_v12, 0.0 }
 0x2ed   :  { %1886 = vmatmul.mubr.msk.f32.vlgmr.msra.gmra.mxu1 %vm206_vm5, %v373_v14  ;;  %v843_v14 = vld [vmem:[#allocation5 + $0x70] sm:$0xff] }
 0x2ee   :  { %1927 = vmatprep.mubr.msk.f32.mxu1 %vm2219_vm0, %v2218_v0  ;;  %1916 = vmatpush3.msra.mxu1 %v1530_v18  ;;  %v1565_v18 = vld [vmem:[%s2857_s9 + $0xb0] sm:$0xff] }
 0x2ef   :  { %1917 = vmatprep.subr.mxu1 %v2218_v0 }
 0x2f0   :  { %1918 = vmatpush3.msra.mxu1 %v1529_v19  ;;  %v1564_v19 = vld [vmem:[%s2857_s9 + $0xa8] sm:$0xff] }
 0x2f1   :  { %1919 = vmatprep.subr.mxu1 %v2218_v0 }
 0x2f2   :  { %1920 = vmatpush3.msra.mxu1 %v1528_v20  ;;  %v1563_v20 = vld [vmem:[%s2857_s9 + $0xa0] sm:$0xff] }
 0x2f3   :  { %1921 = vmatprep.subr.mxu1 %v2218_v0 }
 0x2f4   :  { %1922 = vmatpush3.msra.mxu1 %v1527_v27  ;;  %v1550_v27 = vld [vmem:[%s2854_s6 + $0x1] ss:$0 sm:$0xff] }
 0x2f5   :  { %1923 = vmatprep.subr.mxu1 %v2218_v0 }
 0x2f6   :  { %1924 = vmatpush3.msra.mxu1 %v1526_v28 }
 0x2f7   :  { %1925 = vmatprep.subr.mxu1 %v2218_v0 }
 0x2f8   :  { %1926 = vmatpush3.msra.mxu1 %v1525_v29 }
 0x2f9   :  { %1957 = vmatprep.subr.mxu1 %v2218_v0 }
 0x3ad   :  { %v462_v22 = vpop.f32.mrf.mxu1 }
 0x3ae   :  { %v463_v23 = vadd.f32 %v1521_v21, %v462_v22  ;;  %v1562_v21 = vld [vmem:[%s2857_s9 + $0x98] sm:$0xff]  ;;  %v1561_v22 = vld [vmem:[%s2857_s9 + $0x90] sm:$0xff] }
 0x3af   :  { %v1887_v24 = vpop.f32.mrf.mxu1 }
 0x3b0   :  { %v466_v25 = vmax.f32 %v463_v23, 0.0  ;;  %v1560_v23 = vld [vmem:[%s2857_s9 + $0x88] sm:$0xff]  ;;  %v1559_v24 = vld [vmem:[%s2857_s9 + $0x80] sm:$0xff] }
 0x3b2   :  { %1913 = vmatmul.mubr.msk.f32.vlgmr.msra.gmra.mxu0 %vm206_vm5, %v466_v25  ;;  %v1558_v25 = vld [vmem:[%s2857_s9 + $0x78] sm:$0xff] }
 0x3b3   :  { %1954 = vmatprep.mubr.msk.f32.mxu0 %vm2219_vm0, %v2218_v0  ;;  %1931 = vmatpush3.msra.mxu0 %v1545_v30 }
 0x3b4   :  { %1932 = vmatprep.subr.mxu0 %v2218_v0 }
 0x3b5   :  { %1933 = vmatpush3.msra.mxu0 %v1544_v31 }
 0x3b6   :  { %1934 = vmatprep.subr.mxu0 %v2218_v0 }
 0x3b7   :  { %1935 = vmatpush3.msra.mxu0 %v1543_v32  ;;  %v1557_v32 = vld [vmem:[%s2857_s9 + $0x70] sm:$0xff] }
 0x3b8   :  { %1936 = vmatprep.subr.mxu0 %v2218_v0 }
 0x3b9   :  { %1937 = vmatpush3.msra.mxu0 %v1542_v33  ;;  %v1556_v33 = vld [vmem:[%s2857_s9 + $0x68] sm:$0xff] }
 0x3ba   :  { %1938 = vmatprep.subr.mxu0 %v2218_v0 }
 0x3bb   :  { %1939 = vmatpush3.msra.mxu0 %v1541_v34  ;;  %v1555_v34 = vld [vmem:[%s2857_s9 + $0x60] sm:$0xff] }
 0x3bc   :  { %1940 = vmatprep.subr.mxu0 %v2218_v0 }
 0x3bd   :  { %1941 = vmatpush3.msra.mxu0 %v1540_v35  ;;  %v1575_v35 = vld [vmem:[%s2849_s1 + $0x88] sm:$0xff] }
 0x3be   :  { %1942 = vmatprep.subr.mxu0 %v2218_v0 }
 0x3bf   :  { %1943 = vmatpush3.msra.mxu0 %v1539_v36  ;;  %v1574_v36 = vld [vmem:[%s2849_s1 + $0x80] sm:$0xff] }
 0x3c0   :  { %1944 = vmatprep.subr.mxu0 %v2218_v0 }
 0x3c1   :  { %1945 = vmatpush3.msra.mxu0 %v1538_v37  ;;  %v1573_v37 = vld [vmem:[%s2849_s1 + $0x78] sm:$0xff] }
 0x3c2   :  { %1946 = vmatprep.subr.mxu0 %v2218_v0 }
 0x3c3   :  { %1947 = vmatpush3.msra.mxu0 %v1537_v38  ;;  %v1553_v38 = vld [vmem:[%s2856_s8 + $0x1] ss:$0 sm:$0xff] }
 0x3c4   :  { %1948 = vmatprep.subr.mxu0 %v2218_v0 }
 0x3c5   :  { %1949 = vmatpush3.msra.mxu0 %v1536_v44 }
 0x3c6   :  { %1950 = vmatprep.subr.mxu0 %v2218_v0 }
 0x3c7   :  { %1951 = vmatpush3.msra.mxu0 %v1535_v45  ;;  %v1572_v45 = vld [vmem:[%s2849_s1 + $0x70] sm:$0xff] }
 0x3c8   :  { %1952 = vmatprep.subr.mxu0 %v2218_v0 }
 0x472   :  { %v555_v40 = vpop.f32.mrf.mxu0 }
 0x473   :  { %v2550_v41 = vadd.f32 %v1523_v39, %v555_v40 }
 0x474   :  { %v1914_v42 = vpop.f32.mrf.mxu0 }
 0x475   :  { %v2554_v43 = vsub.f32 %v2373_v26, %v2550_v41  ;;  %v1534_v26 = vld [vmem:[%s2851_s3 + $0x60] sm:$0xff] }
 0x476   :  { %1953 = vmatpush3.msra.mxu0 %v1534_v26  ;;  %v1571_v26 = vld [vmem:[%s2849_s1 + $0x68] sm:$0xff] }
 0x477   :  { %1928 = vmatmul.mubr.msk.f32.vlgmr.msra.gmra.mxu1 %vm112_vm4, %v2554_v43  ;;  %1984 = vmatprep.subr.mxu0 %v2218_v0 }
 0x478   :  { %1981 = vmatprep.mubr.msk.f32.mxu1 %vm2219_vm0, %v2218_v0  ;;  %1958 = vmatpush3.msra.mxu1 %v757_v46  ;;  %v1570_v46 = vld [vmem:[%s2849_s1 + $0x60] sm:$0xff] }
 0x479   :  { %1959 = vmatprep.subr.mxu1 %v2218_v0 }
 0x47a   :  { %1960 = vmatpush3.msra.mxu1 %v756_v47  ;;  %v1590_v47 = vld [vmem:[%s2851_s3 + $0x118] sm:$0xff] }
 0x47b   :  { %1961 = vmatprep.subr.mxu1 %v2218_v0 }
 0x47c   :  { %1962 = vmatpush3.msra.mxu1 %v755_v48  ;;  %v1589_v48 = vld [vmem:[%s2851_s3 + $0x110] sm:$0xff] }
 0x47d   :  { %1963 = vmatprep.subr.mxu1 %v2218_v0 }
 0x47e   :  { %1964 = vmatpush3.msra.mxu1 %v754_v49  ;;  %v1588_v49 = vld [vmem:[%s2851_s3 + $0x108] sm:$0xff] }
 0x47f   :  { %1965 = vmatprep.subr.mxu1 %v2218_v0 }
 0x480   :  { %1966 = vmatpush3.msra.mxu1 %v753_v50  ;;  %v1587_v50 = vld [vmem:[%s2851_s3 + $0x100] sm:$0xff] }
 0x481   :  { %1967 = vmatprep.subr.mxu1 %v2218_v0 }
 0x482   :  { %1968 = vmatpush3.msra.mxu1 %v752_v51  ;;  %v1586_v51 = vld [vmem:[%s2851_s3 + $0xf8] sm:$0xff] }
 0x483   :  { %1969 = vmatprep.subr.mxu1 %v2218_v0 }
 0x484   :  { %1970 = vmatpush3.msra.mxu1 %v751_v52  ;;  %v1585_v52 = vld [vmem:[%s2851_s3 + $0xf0] sm:$0xff] }
 0x485   :  { %1971 = vmatprep.subr.mxu1 %v2218_v0 }
 0x486   :  { %1972 = vmatpush3.msra.mxu1 %v750_v53  ;;  %v1584_v53 = vld [vmem:[%s2851_s3 + $0xe8] sm:$0xff] }
 0x487   :  { %1973 = vmatprep.subr.mxu1 %v2218_v0 }
 0x488   :  { %1974 = vmatpush3.msra.mxu1 %v749_v54  ;;  %v1583_v54 = vld [vmem:[%s2851_s3 + $0xe0] sm:$0xff] }
 0x489   :  { %1975 = vmatprep.subr.mxu1 %v2218_v0 }
 0x48a   :  { %1976 = vmatpush3.msra.mxu1 %v748_v60 }
 0x48b   :  { %1977 = vmatprep.subr.mxu1 %v2218_v0 }
 0x48c   :  { %1978 = vmatpush3.msra.mxu1 %v747_v61  ;;  %v1581_v61 = vld [vmem:[%s2851_s3 + $0xd0] sm:$0xff] }
 0x48d   :  { %1979 = vmatprep.subr.mxu1 %v2218_v0 }
 0x48e   :  { %1980 = vmatpush3.msra.mxu1 %v746_v62  ;;  %v1580_v62 = vld [vmem:[%s2851_s3 + $0xc8] sm:$0xff] }
 0x48f   :  { %2011 = vmatprep.subr.mxu1 %v2218_v0 }
 0x537   :  { %v645_v56 = vpop.f32.mrf.mxu1 }
 0x538   :  { %v646_v57 = vadd.f32 %v1532_v55, %v645_v56  ;;  %v1582_v55 = vld [vmem:[%s2851_s3 + $0xd8] sm:$0xff]  ;;  %v1568_v56 = vld [vmem:[%s2858_s10 + $0x1] ss:$0 sm:$0xff] }
 0x539   :  { %v1929_v58 = vpop.f32.mrf.mxu1 }
 0x53a   :  { %v649_v59 = vmax.f32 %v646_v57, 0.0 }
 0x53c   :  { %1955 = vmatmul.mubr.msk.f32.vlgmr.msra.gmra.mxu0 %vm206_vm5, %v649_v59 }
 0x53d   :  { %2008 = vmatprep.mubr.msk.f32.mxu0 %vm2219_vm0, %v2218_v0  ;;  %1985 = vmatpush3.msra.mxu0 %v852_v63  ;;  %v1227_v63 = vld [vmem:[#allocation3 + $0x118] sm:$0xff] }
 0x53e   :  { %1986 = vmatprep.subr.mxu0 %v2218_v0 }
 0x53f   :  { %1987 = vmatpush3.msra.mxu0 %v851_v1  ;;  %v1226_v1 = vld [vmem:[#allocation3 + $0x110] sm:$0xff] }
 0x540   :  { %1988 = vmatprep.subr.mxu0 %v2218_v0 }
 0x541   :  { %1989 = vmatpush3.msra.mxu0 %v850_v2  ;;  %v1225_v2 = vld [vmem:[#allocation3 + $0x108] sm:$0xff] }
 0x542   :  { %1990 = vmatprep.subr.mxu0 %v2218_v0 }
 0x543   :  { %1991 = vmatpush3.msra.mxu0 %v849_v3  ;;  %v1224_v3 = vld [vmem:[#allocation3 + $0x100] sm:$0xff] }
 0x544   :  { %1992 = vmatprep.subr.mxu0 %v2218_v0 }
 0x545   :  { %1993 = vmatpush3.msra.mxu0 %v848_v4  ;;  %v1223_v4 = vld [vmem:[#allocation3 + $0xf8] sm:$0xff] }
 0x546   :  { %1994 = vmatprep.subr.mxu0 %v2218_v0 }
 0x547   :  { %1995 = vmatpush3.msra.mxu0 %v847_v5  ;;  %v1222_v5 = vld [vmem:[#allocation3 + $0xf0] sm:$0xff] }
 0x548   :  { %1996 = vmatprep.subr.mxu0 %v2218_v0 }
 0x549   :  { %1997 = vmatpush3.msra.mxu0 %v846_v6  ;;  %v1221_v6 = vld [vmem:[#allocation3 + $0xe8] sm:$0xff] }
 0x54a   :  { %1998 = vmatprep.subr.mxu0 %v2218_v0 }
 0x54b   :  { %1999 = vmatpush3.msra.mxu0 %v845_v7  ;;  %v1220_v7 = vld [vmem:[#allocation3 + $0xe0] sm:$0xff] }
 0x54c   :  { %2000 = vmatprep.subr.mxu0 %v2218_v0 }
 0x54d   :  { %2001 = vmatpush3.msra.mxu0 %v844_v8  ;;  %v1219_v8 = vld [vmem:[#allocation3 + $0xd8] sm:$0xff] }
 0x54e   :  { %2002 = vmatprep.subr.mxu0 %v2218_v0 }
 0x54f   :  { %2003 = vmatpush3.msra.mxu0 %v843_v14  ;;  %v1218_v14 = vld [vmem:[#allocation3 + $0xd0] sm:$0xff] }
 0x550   :  { %2004 = vmatprep.subr.mxu0 %v2218_v0 }
 0x551   :  { %2005 = vmatpush3.msra.mxu0 %v842_v15  ;;  %v1217_v15 = vld [vmem:[#allocation3 + $0xc8] sm:$0xff] }
 0x552   :  { %2006 = vmatprep.subr.mxu0 %v2218_v0 }
 0x553   :  { %2007 = vmatpush3.msra.mxu0 %v841_v16  ;;  %v1216_v16 = vld [vmem:[#allocation3 + $0xc0] sm:$0xff] }
 0x554   :  { %2038 = vmatprep.subr.mxu0 %v2218_v0 }
 0x5fc   :  { %v740_v10 = vpop.f32.mrf.mxu0 }
 0x5fd   :  { %v741_v11 = vadd.f32 %v1547_v9, %v740_v10  ;;  %v1577_v9 = vld [vmem:[%s2850_s2 + $0x2] ss:$0 sm:$0xff] }
 0x5fe   :  { %v1956_v12 = vpop.f32.mrf.mxu0 }
 0x5ff   :  { %v744_v13 = vmax.f32 %v741_v11, 0.0 }
 0x601   :  { %1982 = vmatmul.mubr.msk.f32.vlgmr.msra.gmra.mxu1 %vm206_vm5, %v744_v13 }
 0x602   :  { %2035 = vmatprep.mubr.msk.f32.mxu1 %vm2219_vm0, %v2218_v0  ;;  %2012 = vmatpush3.msra.mxu1 %v1566_v17  ;;  %v1322_v17 = vld [vmem:[#allocation5 + $0x118] sm:$0xff] }
 0x603   :  { %2013 = vmatprep.subr.mxu1 %v2218_v0 }
 0x604   :  { %2014 = vmatpush3.msra.mxu1 %v1565_v18  ;;  %v1321_v18 = vld [vmem:[#allocation5 + $0x110] sm:$0xff] }
 0x605   :  { %2015 = vmatprep.subr.mxu1 %v2218_v0 }
 0x606   :  { %2016 = vmatpush3.msra.mxu1 %v1564_v19  ;;  %v1320_v19 = vld [vmem:[#allocation5 + $0x108] sm:$0xff] }
 0x607   :  { %2017 = vmatprep.subr.mxu1 %v2218_v0 }
 0x608   :  { %2018 = vmatpush3.msra.mxu1 %v1563_v20  ;;  %v1319_v20 = vld [vmem:[#allocation5 + $0x100] sm:$0xff] }
 0x609   :  { %2019 = vmatprep.subr.mxu1 %v2218_v0 }
 0x60a   :  { %2020 = vmatpush3.msra.mxu1 %v1562_v21  ;;  %v1318_v21 = vld [vmem:[#allocation5 + $0xf8] sm:$0xff] }
 0x60b   :  { %2021 = vmatprep.subr.mxu1 %v2218_v0 }
 0x60c   :  { %2022 = vmatpush3.msra.mxu1 %v1561_v22  ;;  %v1317_v22 = vld [vmem:[#allocation5 + $0xf0] sm:$0xff] }
 0x60d   :  { %2023 = vmatprep.subr.mxu1 %v2218_v0 }
 0x60e   :  { %2024 = vmatpush3.msra.mxu1 %v1560_v23  ;;  %v1316_v23 = vld [vmem:[#allocation5 + $0xe8] sm:$0xff] }
 0x60f   :  { %2025 = vmatprep.subr.mxu1 %v2218_v0 }
 0x610   :  { %2026 = vmatpush3.msra.mxu1 %v1559_v24  ;;  %v1315_v24 = vld [vmem:[#allocation5 + $0xe0] sm:$0xff] }
 0x611   :  { %2027 = vmatprep.subr.mxu1 %v2218_v0 }
 0x612   :  { %2028 = vmatpush3.msra.mxu1 %v1558_v25  ;;  %v1314_v25 = vld [vmem:[#allocation5 + $0xd8] sm:$0xff] }
 0x613   :  { %2029 = vmatprep.subr.mxu1 %v2218_v0 }
 0x614   :  { %2030 = vmatpush3.msra.mxu1 %v1557_v32  ;;  %v1313_v32 = vld [vmem:[#allocation5 + $0xd0] sm:$0xff] }
 0x615   :  { %2031 = vmatprep.subr.mxu1 %v2218_v0 }
 0x616   :  { %2032 = vmatpush3.msra.mxu1 %v1556_v33  ;;  %v1312_v33 = vld [vmem:[#allocation5 + $0xc8] sm:$0xff] }
 0x617   :  { %2033 = vmatprep.subr.mxu1 %v2218_v0 }
 0x618   :  { %2034 = vmatpush3.msra.mxu1 %v1555_v34  ;;  %v1311_v34 = vld [vmem:[#allocation5 + $0xc0] sm:$0xff] }
 0x619   :  { %2053 = vmatprep.subr.mxu1 %v2218_v0 }
 0x6c1   :  { %v835_v28 = vpop.f32.mrf.mxu1 }
 0x6c2   :  { %v836_v29 = vadd.f32 %v1550_v27, %v835_v28  ;;  %v1592_v27 = vld [vmem:[%s2852_s4 + $0x2] ss:$0 sm:$0xff] }
 0x6c3   :  { %v1983_v30 = vpop.f32.mrf.mxu1 }
 0x6c4   :  { %v839_v31 = vmax.f32 %v836_v29, 0.0 }
 0x6c6   :  { %2009 = vmatmul.mubr.msk.f32.vlgmr.msra.gmra.mxu0 %vm206_vm5, %v839_v31 }
 0x6c7   :  { %2050 = vmatprep.mubr.msk.f32.mxu0 %vm2219_vm0, %v2218_v0  ;;  %2039 = vmatpush3.msra.mxu0 %v1575_v35  ;;  %v1611_v35 = vld [vmem:[%s2857_s9 + $0x118] sm:$0xff] }
 0x6c8   :  { %2040 = vmatprep.subr.mxu0 %v2218_v0 }
 0x6c9   :  { %2041 = vmatpush3.msra.mxu0 %v1574_v36  ;;  %v1610_v36 = vld [vmem:[%s2857_s9 + $0x110] sm:$0xff] }
 0x6ca   :  { %2042 = vmatprep.subr.mxu0 %v2218_v0 }
 0x6cb   :  { %2043 = vmatpush3.msra.mxu0 %v1573_v37  ;;  %v1609_v37 = vld [vmem:[%s2857_s9 + $0x108] sm:$0xff] }
 0x6cc   :  { %2044 = vmatprep.subr.mxu0 %v2218_v0 }
 0x6cd   :  { %2045 = vmatpush3.msra.mxu0 %v1572_v45  ;;  %v1603_v45 = vld [vmem:[%s2857_s9 + $0xd8] sm:$0xff] }
 0x6ce   :  { %2046 = vmatprep.subr.mxu0 %v2218_v0 }
 0x6cf   :  { %2047 = vmatpush3.msra.mxu0 %v1571_v26  ;;  %v1595_v26 = vld [vmem:[%s2854_s6 + $0x2] ss:$0 sm:$0xff] }
 0x6d0   :  { %2048 = vmatprep.subr.mxu0 %v2218_v0 }
 0x6d1   :  { %2049 = vmatpush3.msra.mxu0 %v1570_v46 }
 0x6d2   :  { %2080 = vmatprep.subr.mxu0 %v2218_v0 }
 0x786   :  { %v930_v39 = vpop.f32.mrf.mxu0 }
 0x787   :  { %v931_v40 = vadd.f32 %v1553_v38, %v930_v39  ;;  %v1608_v38 = vld [vmem:[%s2857_s9 + $0x100] sm:$0xff]  ;;  %v1607_v39 = vld [vmem:[%s2857_s9 + $0xf8] sm:$0xff] }
 0x788   :  { %v2010_v42 = vpop.f32.mrf.mxu0 }
 0x789   :  { %v934_v44 = vmax.f32 %v931_v40, 0.0  ;;  %v1606_v40 = vld [vmem:[%s2857_s9 + $0xf0] sm:$0xff]  ;;  %v1605_v42 = vld [vmem:[%s2857_s9 + $0xe8] sm:$0xff] }
 0x78b   :  { %2036 = vmatmul.mubr.msk.f32.vlgmr.msra.gmra.mxu1 %vm206_vm5, %v934_v44  ;;  %v1604_v44 = vld [vmem:[%s2857_s9 + $0xe0] sm:$0xff] }
 0x78c   :  { %2077 = vmatprep.mubr.msk.f32.mxu1 %vm2219_vm0, %v2218_v0  ;;  %2054 = vmatpush3.msra.mxu1 %v1590_v47 }
 0x78d   :  { %2055 = vmatprep.subr.mxu1 %v2218_v0 }
 0x78e   :  { %2056 = vmatpush3.msra.mxu1 %v1589_v48 }
 0x78f   :  { %2057 = vmatprep.subr.mxu1 %v2218_v0 }
 0x790   :  { %2058 = vmatpush3.msra.mxu1 %v1588_v49 }
 0x791   :  { %2059 = vmatprep.subr.mxu1 %v2218_v0 }
 0x792   :  { %2060 = vmatpush3.msra.mxu1 %v1587_v50  ;;  %v1602_v50 = vld [vmem:[%s2857_s9 + $0xd0] sm:$0xff] }
 0x793   :  { %2061 = vmatprep.subr.mxu1 %v2218_v0 }
 0x794   :  { %2062 = vmatpush3.msra.mxu1 %v1586_v51  ;;  %v1601_v51 = vld [vmem:[%s2857_s9 + $0xc8] sm:$0xff] }
 0x795   :  { %2063 = vmatprep.subr.mxu1 %v2218_v0 }
 0x796   :  { %2064 = vmatpush3.msra.mxu1 %v1585_v52  ;;  %v1600_v52 = vld [vmem:[%s2857_s9 + $0xc0] sm:$0xff]  ;;  %s2222_s9 = smov 80  }
 0x797   :  { %2065 = vmatprep.subr.mxu1 %v2218_v0 }
 0x798   :  { %2066 = vmatpush3.msra.mxu1 %v1584_v53  ;;  %v1598_v53 = vld [vmem:[%s2856_s8 + $0x2] ss:$0 sm:$0xff] }
 0x799   :  { %2067 = vmatprep.subr.mxu1 %v2218_v0 }
 0x79a   :  { %2068 = vmatpush3.msra.mxu1 %v1583_v54 }
 0x79b   :  { %2069 = vmatprep.subr.mxu1 %v2218_v0 }
 0x79c   :  { %2070 = vmatpush3.msra.mxu1 %v1582_v55 }
 0x79d   :  { %2071 = vmatprep.subr.mxu1 %v2218_v0 }
 0x79e   :  { %2072 = vmatpush3.msra.mxu1 %v1581_v61 }
 0x79f   :  { %2073 = vmatprep.subr.mxu1 %v2218_v0 }
 0x7a0   :  { %2074 = vmatpush3.msra.mxu1 %v1580_v62 }
 0x7a1   :  { %2075 = vmatprep.subr.mxu1 %v2218_v0 }
 0x84b   :  { %v1025_v57 = vpop.f32.mrf.mxu1 }
 0x84c   :  { %v2731_v58 = vadd.f32 %v1568_v56, %v1025_v57 }
 0x84d   :  { %v2037_v59 = vpop.f32.mrf.mxu1 }
 0x84e   :  { %v1029_v60 = vsub.f32 %v2554_v43, %v2731_v58  ;;  %v1579_v43 = vld [vmem:[%s2851_s3 + $0xc0] sm:$0xff] }
 0x84f   :  { %2076 = vmatpush3.msra.mxu1 %v1579_v43  ;;  %v1613_v59 = vld [vmem:[%s2858_s10 + $0x2] ss:$0 sm:$0xff] }
 0x850   :  { %2051 = vmatmul.mubr.msk.f32.vlgmr.msra.gmra.mxu0 %vm112_vm4, %v1029_v60  ;;  %2107 = vmatprep.subr.mxu1 %v2218_v0  ;;  %v1030_v60 = vadd.f32 %v2731_v58, %v2550_v41 }
 0x851   :  { %2104 = vmatprep.mubr.msk.f32.mxu0 %vm2219_vm0, %v2218_v0  ;;  %2081 = vmatpush3.msra.mxu0 %v1227_v63 }
 0x852   :  { %2082 = vmatprep.subr.mxu0 %v2218_v0 }
 0x853   :  { %2083 = vmatpush3.msra.mxu0 %v1226_v1 }
 0x854   :  { %2084 = vmatprep.subr.mxu0 %v2218_v0 }
 0x855   :  { %2085 = vmatpush3.msra.mxu0 %v1225_v2 }
 0x856   :  { %2086 = vmatprep.subr.mxu0 %v2218_v0 }
 0x857   :  { %2087 = vmatpush3.msra.mxu0 %v1224_v3 }
 0x858   :  { %2088 = vmatprep.subr.mxu0 %v2218_v0 }
 0x859   :  { %2089 = vmatpush3.msra.mxu0 %v1223_v4 }
 0x85a   :  { %2090 = vmatprep.subr.mxu0 %v2218_v0 }
 0x85b   :  { %2091 = vmatpush3.msra.mxu0 %v1222_v5 }
 0x85c   :  { %2092 = vmatprep.subr.mxu0 %v2218_v0 }
 0x85d   :  { %2093 = vmatpush3.msra.mxu0 %v1221_v6 }
 0x85e   :  { %2094 = vmatprep.subr.mxu0 %v2218_v0 }
 0x85f   :  { %2095 = vmatpush3.msra.mxu0 %v1220_v7 }
 0x860   :  { %2096 = vmatprep.subr.mxu0 %v2218_v0 }
 0x861   :  { %2097 = vmatpush3.msra.mxu0 %v1219_v8 }
 0x862   :  { %2098 = vmatprep.subr.mxu0 %v2218_v0 }
 0x863   :  { %2099 = vmatpush3.msra.mxu0 %v1218_v14 }
 0x864   :  { %2100 = vmatprep.subr.mxu0 %v2218_v0 }
 0x865   :  { %2101 = vmatpush3.msra.mxu0 %v1217_v15 }
 0x866   :  { %2102 = vmatprep.subr.mxu0 %v2218_v0 }
 0x867   :  { %2103 = vmatpush3.msra.mxu0 %v1216_v16 }
 0x868   :  { %2134 = vmatprep.subr.mxu0 %v2218_v0 }
 0x910   :  { %v1115_v10 = vpop.f32.mrf.mxu0 }
 0x911   :  { %v1116_v11 = vadd.f32 %v1577_v9, %v1115_v10 }
 0x912   :  { %v2052_v12 = vpop.f32.mrf.mxu0 }
 0x913   :  { %v1119_v13 = vmax.f32 %v1116_v11, 0.0 }
 0x915   :  { %2078 = vmatmul.mubr.msk.f32.vlgmr.msra.gmra.mxu1 %vm206_vm5, %v1119_v13 }
 0x916   :  { %2131 = vmatprep.mubr.msk.f32.mxu1 %vm2219_vm0, %v2218_v0  ;;  %2108 = vmatpush3.msra.mxu1 %v1322_v17 }
 0x917   :  { %2109 = vmatprep.subr.mxu1 %v2218_v0 }
 0x918   :  { %2110 = vmatpush3.msra.mxu1 %v1321_v18 }
 0x919   :  { %2111 = vmatprep.subr.mxu1 %v2218_v0 }
 0x91a   :  { %2112 = vmatpush3.msra.mxu1 %v1320_v19 }
 0x91b   :  { %2113 = vmatprep.subr.mxu1 %v2218_v0 }
 0x91c   :  { %2114 = vmatpush3.msra.mxu1 %v1319_v20 }
 0x91d   :  { %2115 = vmatprep.subr.mxu1 %v2218_v0 }
 0x91e   :  { %2116 = vmatpush3.msra.mxu1 %v1318_v21 }
 0x91f   :  { %2117 = vmatprep.subr.mxu1 %v2218_v0 }
 0x920   :  { %2118 = vmatpush3.msra.mxu1 %v1317_v22 }
 0x921   :  { %2119 = vmatprep.subr.mxu1 %v2218_v0 }
 0x922   :  { %2120 = vmatpush3.msra.mxu1 %v1316_v23 }
 0x923   :  { %2121 = vmatprep.subr.mxu1 %v2218_v0 }
 0x924   :  { %2122 = vmatpush3.msra.mxu1 %v1315_v24 }
 0x925   :  { %2123 = vmatprep.subr.mxu1 %v2218_v0 }
 0x926   :  { %2124 = vmatpush3.msra.mxu1 %v1314_v25 }
 0x927   :  { %2125 = vmatprep.subr.mxu1 %v2218_v0 }
 0x928   :  { %2126 = vmatpush3.msra.mxu1 %v1313_v32 }
 0x929   :  { %2127 = vmatprep.subr.mxu1 %v2218_v0 }
 0x92a   :  { %2128 = vmatpush3.msra.mxu1 %v1312_v33 }
 0x92b   :  { %2129 = vmatprep.subr.mxu1 %v2218_v0 }
 0x92c   :  { %2130 = vmatpush3.msra.mxu1 %v1311_v34 }
 0x9d5   :  { %v1210_v28 = vpop.f32.mrf.mxu1 }
 0x9d6   :  { %v1211_v29 = vadd.f32 %v1592_v27, %v1210_v28 }
 0x9d7   :  { %v2079_v30 = vpop.f32.mrf.mxu1 }
 0x9d8   :  { %v1214_v31 = vmax.f32 %v1211_v29, 0.0 }
 0x9da   :  { %2105 = vmatmul.mubr.msk.f32.vlgmr.msra.gmra.mxu0 %vm206_vm5, %v1214_v31 }
 0x9db   :  { %2158 = vmatprep.mubr.msk.f32.mxu0 %vm2219_vm0, %v2218_v0  ;;  %2135 = vmatpush3.msra.mxu0 %v1611_v35 }
 0x9dc   :  { %2136 = vmatprep.subr.mxu0 %v2218_v0 }
 0x9dd   :  { %2137 = vmatpush3.msra.mxu0 %v1610_v36 }
 0x9de   :  { %2138 = vmatprep.subr.mxu0 %v2218_v0 }
 0x9df   :  { %2139 = vmatpush3.msra.mxu0 %v1609_v37 }
 0x9e0   :  { %2140 = vmatprep.subr.mxu0 %v2218_v0 }
 0x9e1   :  { %2141 = vmatpush3.msra.mxu0 %v1608_v38 }
 0x9e2   :  { %2142 = vmatprep.subr.mxu0 %v2218_v0 }
 0x9e3   :  { %2143 = vmatpush3.msra.mxu0 %v1607_v39 }
 0x9e4   :  { %2144 = vmatprep.subr.mxu0 %v2218_v0 }
 0x9e5   :  { %2145 = vmatpush3.msra.mxu0 %v1606_v40 }
 0x9e6   :  { %2146 = vmatprep.subr.mxu0 %v2218_v0 }
 0x9e7   :  { %2147 = vmatpush3.msra.mxu0 %v1605_v42 }
 0x9e8   :  { %2148 = vmatprep.subr.mxu0 %v2218_v0 }
 0x9e9   :  { %2149 = vmatpush3.msra.mxu0 %v1604_v44 }
 0x9ea   :  { %2150 = vmatprep.subr.mxu0 %v2218_v0 }
 0x9eb   :  { %2151 = vmatpush3.msra.mxu0 %v1603_v45 }
 0x9ec   :  { %2152 = vmatprep.subr.mxu0 %v2218_v0 }
 0x9ed   :  { %2153 = vmatpush3.msra.mxu0 %v1602_v50 }
 0x9ee   :  { %2154 = vmatprep.subr.mxu0 %v2218_v0 }
 0x9ef   :  { %2155 = vmatpush3.msra.mxu0 %v1601_v51 }
 0x9f0   :  { %2156 = vmatprep.subr.mxu0 %v2218_v0 }
 0x9f1   :  { %2157 = vmatpush3.msra.mxu0 %v1600_v52 }
 0xa9a   :  { %v1305_v46 = vpop.f32.mrf.mxu0 }
 0xa9b   :  { %v1306_v47 = vadd.f32 %v1595_v26, %v1305_v46 }
 0xa9c   :  { %v2106_v48 = vpop.f32.mrf.mxu0 }
 0xa9d   :  { %v1309_v49 = vmax.f32 %v1306_v47, 0.0 }
 0xa9f   :  { %2132 = vmatmul.mubr.msk.f32.vlgmr.msra.gmra.mxu1 %vm206_vm5, %v1309_v49 }
 0xb5f   :  { %v1400_v54 = vpop.f32.mrf.mxu1 }
 0xb60   :  { %v1401_v55 = vadd.f32 %v1598_v53, %v1400_v54 }
 0xb61   :  { %v2133_v56 = vpop.f32.mrf.mxu1 }
 0xb62   :  { %v1404_v57 = vmax.f32 %v1401_v55, 0.0 }
 0xb64   :  { %2159 = vmatmul.mubr.msk.f32.vlgmr.msra.gmra.mxu0 %vm206_vm5, %v1404_v57 }
 0xc24   :  { %v1495_v0 = vpop.f32.mrf.mxu0 }
 0xc25   :  { %v1496_v61 = vadd.f32 %v1613_v59, %v1495_v0 }
 0xc26   :  { %v2160_v62 = vpop.f32.mrf.mxu0 }
 0xc27   :  { %v1499_v43 = vadd.f32 %v1496_v61, %v1030_v60 }
 0xc29   :  { %1501 = vrot.lane.b32.xlu0 %v1499_v43, %s2222_s9 }
 0xc9b   :  { %v1502_v63 = vpop.permute.xlu0 %1501 }
 0xc9c   :  { %1505 = vst.msk [vmem:[%s2859_s11] sm:$0x3f] %vm1504_vm6, %v1502_v63 }
 0xc9d   :  { %1510 = vsyncpa [#allocation4], 1 }
 0xc9e   :  { %1511 = vsyncpa [#allocation6], 1 }

</bundles_post_ra>
